<compile_context>
chip_gen: v6e
topology: v6e:2x2x1
jax: 0.10.0
libtpu: 0.0.40
codegen_flags: <defaults>
</compile_context>

<pallas_src>
import functools
import math

import jax
import jax.numpy as jnp
from jax.experimental import pallas as pl
from jax.experimental.pallas import tpu as pltpu

# Keep f32 matmuls exact on the MXU so the Pallas kernel and the pure-JAX
# reference agree to float32 accuracy.
jax.config.update("jax_default_matmul_precision", "highest")


def _layer_norm(x, gamma, beta, eps):
    """Matches LayerNormalisation: torch.std is unbiased; eps added to std."""
    d = x.shape[-1]
    mean = jnp.mean(x, axis=-1, keepdims=True)
    diff = x - mean
    var = jnp.sum(diff * diff, axis=-1, keepdims=True) / (d - 1)
    std = jnp.sqrt(var)
    return gamma * (diff / (std + eps)) + beta


def _encoder_block_kernel(
    x_ref, mask_ref,
    wq_ref, bq_ref, wk_ref, bk_ref, wv_ref, bv_ref, wo_ref, bo_ref,
    g1_ref, be1_ref,
    w1_ref, b1_ref, w2_ref, b2_ref,
    g2_ref, be2_ref,
    out_ref,
    att_ref,                       # VMEM scratch (S, D)
    *, num_heads, scale, eps):
    x = x_ref[0]                   # (S, D)
    mask = mask_ref[0]             # (S, S)  1.0 = attend, 0.0 = masked
    seq, d_model = x.shape
    d_k = d_model // num_heads

    # ---- Multi-head self-attention --------------------------------------
    q = jnp.dot(x, wq_ref[...], preferred_element_type=jnp.float32) + bq_ref[...]
    k = jnp.dot(x, wk_ref[...], preferred_element_type=jnp.float32) + bk_ref[...]
    v = jnp.dot(x, wv_ref[...], preferred_element_type=jnp.float32) + bv_ref[...]

    # TODO(synk): for long sequences tile the KV axis (flash-style online
    # softmax) instead of materializing the full (S, S) scores per head.
    for h in range(num_heads):     # static, unrolled over heads
        lo = h * d_k
        qh = q[:, lo:lo + d_k]
        kh = k[:, lo:lo + d_k]
        vh = v[:, lo:lo + d_k]
        s = jnp.dot(qh, kh.T, preferred_element_type=jnp.float32) * scale
        s = jnp.where(mask == 0.0, -1e9, s)
        s = s - jnp.max(s, axis=-1, keepdims=True)
        p = jnp.exp(s)
        p = p / jnp.sum(p, axis=-1, keepdims=True)
        att_ref[:, lo:lo + d_k] = jnp.dot(p, vh, preferred_element_type=jnp.float32)

    att = jnp.dot(att_ref[...], wo_ref[...],
                  preferred_element_type=jnp.float32) + bo_ref[...]

    # ---- Residual + LayerNorm 1 ------------------------------------------
    y = _layer_norm(x + att, g1_ref[...], be1_ref[...], eps)

    # ---- Feed-forward ------------------------------------------------------
    hidden = jnp.dot(y, w1_ref[...], preferred_element_type=jnp.float32) + b1_ref[...]
    hidden = jnp.maximum(hidden, 0.0)
    z = jnp.dot(hidden, w2_ref[...], preferred_element_type=jnp.float32) + b2_ref[...]

    # ---- Residual + LayerNorm 2 ------------------------------------------
    out = _layer_norm(y + z, g2_ref[...], be2_ref[...], eps)
    out_ref[0] = out.astype(out_ref.dtype)


def encoder_block(x, src_mask, params, *, num_heads, eps=1e-9):
    """x: (B, S, D) f32; src_mask: (B, S, S) f32 (1 keep / 0 mask) -> (B, S, D)."""
    B, S, D = x.shape
    assert D % num_heads == 0
    d_ff = params["w1"].shape[1]
    d_k = D // num_heads

    kernel = functools.partial(
        _encoder_block_kernel,
        num_heads=num_heads,
        scale=1.0 / math.sqrt(d_k),
        eps=eps,
    )

    def fixed(shape):
        return pl.BlockSpec(shape, lambda b, _s=shape: (0,) * len(_s))

    in_specs = [
        pl.BlockSpec((1, S, D), lambda b: (b, 0, 0)),   # x
        pl.BlockSpec((1, S, S), lambda b: (b, 0, 0)),   # src_mask
        fixed((D, D)), fixed((1, D)),                   # wq, bq
        fixed((D, D)), fixed((1, D)),                   # wk, bk
        fixed((D, D)), fixed((1, D)),                   # wv, bv
        fixed((D, D)), fixed((1, D)),                   # wo, bo
        fixed((1, D)), fixed((1, D)),                   # gamma1, beta1
        fixed((D, d_ff)), fixed((1, d_ff)),             # w1, b1
        fixed((d_ff, D)), fixed((1, D)),                # w2, b2
        fixed((1, D)), fixed((1, D)),                   # gamma2, beta2
    ]

    return pl.pallas_call(
        kernel,
        out_shape=jax.ShapeDtypeStruct((B, S, D), jnp.float32),
        grid_spec=pltpu.PrefetchScalarGridSpec(
            num_scalar_prefetch=0,
            grid=(B,),
            in_specs=in_specs,
            out_specs=pl.BlockSpec((1, S, D), lambda b: (b, 0, 0)),
            scratch_shapes=[pltpu.VMEM((S, D), jnp.float32)],
        ),
        compiler_params=pltpu.CompilerParams(
            dimension_semantics=("parallel",),
            vmem_limit_bytes=32 * 1024 * 1024,
        ),
    )(
        x, src_mask,
        params["wq"], params["bq"], params["wk"], params["bk"],
        params["wv"], params["bv"], params["wo"], params["bo"],
        params["g1"], params["be1"],
        params["w1"], params["b1"], params["w2"], params["b2"],
        params["g2"], params["be2"],
    )


def encoder_block_ref(x, src_mask, params, *, num_heads, eps=1e-9):
    """Pure-JAX reference matching the PyTorch EncoderBlock forward."""
    B, S, D = x.shape
    d_k = D // num_heads

    q = x @ params["wq"] + params["bq"]
    k = x @ params["wk"] + params["bk"]
    v = x @ params["wv"] + params["bv"]

    def split(t):
        return t.reshape(B, S, num_heads, d_k).transpose(0, 2, 1, 3)  # (B,h,S,dk)

    qh, kh, vh = split(q), split(k), split(v)
    s = jnp.einsum("bhqd,bhkd->bhqk", qh, kh) / math.sqrt(d_k)
    s = jnp.where(src_mask[:, None, :, :] == 0.0, -1e9, s)
    p = jax.nn.softmax(s, axis=-1)
    att = jnp.einsum("bhqk,bhkd->bhqd", p, vh)
    att = att.transpose(0, 2, 1, 3).reshape(B, S, D)
    att = att @ params["wo"] + params["bo"]

    y = _layer_norm(x + att, params["g1"], params["be1"], eps)
    hidden = jax.nn.relu(y @ params["w1"] + params["b1"])
    z = hidden @ params["w2"] + params["b2"]
    return _layer_norm(y + z, params["g2"], params["be2"], eps)


if __name__ == "__main__":
    d_model, num_heads, d_ff = 32, 4, 64
    batch, seq = 2, 8

    key = jax.random.PRNGKey(0)
    ks = jax.random.split(key, 13)

    def init(k, shape, scale):
        return jax.random.normal(k, shape, dtype=jnp.float32) * scale

    w_scale = 1.0 / math.sqrt(d_model)
    params = {
        "wq": init(ks[0], (d_model, d_model), w_scale),
        "bq": init(ks[1], (1, d_model), 0.1),
        "wk": init(ks[2], (d_model, d_model), w_scale),
        "bk": init(ks[3], (1, d_model), 0.1),
        "wv": init(ks[4], (d_model, d_model), w_scale),
        "bv": init(ks[5], (1, d_model), 0.1),
        "wo": init(ks[6], (d_model, d_model), w_scale),
        "bo": init(ks[7], (1, d_model), 0.1),
        "g1": jnp.ones((1, d_model), jnp.float32),    # LayerNormalisation init
        "be1": jnp.zeros((1, d_model), jnp.float32),
        "w1": init(ks[8], (d_model, d_ff), w_scale),
        "b1": init(ks[9], (1, d_ff), 0.1),
        "w2": init(ks[10], (d_ff, d_model), 1.0 / math.sqrt(d_ff)),
        "b2": init(ks[11], (1, d_model), 0.1),
        "g2": jnp.ones((1, d_model), jnp.float32),
        "be2": jnp.zeros((1, d_model), jnp.float32),
    }

    x = jax.random.normal(ks[12], (batch, seq, d_model), dtype=jnp.float32)

    # src_mask: batch 0 attends to all positions; batch 1 masks the last 2 keys.
    lengths = jnp.array([seq, seq - 2], dtype=jnp.int32)
    key_keep = (jnp.arange(seq)[None, :] < lengths[:, None]).astype(jnp.float32)  # (B, S)
    src_mask = jnp.ones((batch, seq, seq), jnp.float32) * key_keep[:, None, :]

    out = encoder_block(x, src_mask, params, num_heads=num_heads)
    out = jax.block_until_ready(out)

    ref = encoder_block_ref(x, src_mask, params, num_heads=num_heads)
    assert out.shape == (batch, seq, d_model)
    err = float(jnp.max(jnp.abs(out - ref)))
    assert err < 1e-3, f"max abs err {err}"

    print("KERNEL_OK")
</pallas_src>

<mosaic_0001>
module attributes {stable_mosaic.version = 11 : i64} {
  func.func @_encoder_block_kernel(%arg0: i32, %arg1: memref<1x8x32xf32, #tpu.memory_space<vmem>>, %arg2: memref<1x8x8xf32, #tpu.memory_space<vmem>>, %arg3: memref<32x32xf32, #tpu.memory_space<vmem>>, %arg4: memref<1x32xf32, #tpu.memory_space<vmem>>, %arg5: memref<32x32xf32, #tpu.memory_space<vmem>>, %arg6: memref<1x32xf32, #tpu.memory_space<vmem>>, %arg7: memref<32x32xf32, #tpu.memory_space<vmem>>, %arg8: memref<1x32xf32, #tpu.memory_space<vmem>>, %arg9: memref<32x32xf32, #tpu.memory_space<vmem>>, %arg10: memref<1x32xf32, #tpu.memory_space<vmem>>, %arg11: memref<1x32xf32, #tpu.memory_space<vmem>>, %arg12: memref<1x32xf32, #tpu.memory_space<vmem>>, %arg13: memref<32x64xf32, #tpu.memory_space<vmem>>, %arg14: memref<1x64xf32, #tpu.memory_space<vmem>>, %arg15: memref<64x32xf32, #tpu.memory_space<vmem>>, %arg16: memref<1x32xf32, #tpu.memory_space<vmem>>, %arg17: memref<1x32xf32, #tpu.memory_space<vmem>>, %arg18: memref<1x32xf32, #tpu.memory_space<vmem>>, %arg19: memref<1x8x32xf32, #tpu.memory_space<vmem>>, %arg20: memref<8x32xf32, #tpu.memory_space<vmem>>) attributes {dimension_semantics = [#tpu.dimension_semantics<parallel>], iteration_bounds = array<i64: 2>, scalar_prefetch = 0 : i64, scratch_operands = 1 : i64, tpu.core_type = #tpu.core_type<tc>, window_params = [{transform_indices = @transform_0, window_bounds = array<i64: 1, 8, 32>}, {transform_indices = @transform_1, window_bounds = array<i64: 1, 8, 8>}, {pipeline_mode = #tpu.pipeline_mode<synchronous>, transform_indices = @transform_2, window_bounds = array<i64: 32, 32>}, {pipeline_mode = #tpu.pipeline_mode<synchronous>, transform_indices = @transform_3, window_bounds = array<i64: 1, 32>}, {pipeline_mode = #tpu.pipeline_mode<synchronous>, transform_indices = @transform_4, window_bounds = array<i64: 32, 32>}, {pipeline_mode = #tpu.pipeline_mode<synchronous>, transform_indices = @transform_5, window_bounds = array<i64: 1, 32>}, {pipeline_mode = #tpu.pipeline_mode<synchronous>, transform_indices = @transform_6, window_bounds = array<i64: 32, 32>}, {pipeline_mode = #tpu.pipeline_mode<synchronous>, transform_indices = @transform_7, window_bounds = array<i64: 1, 32>}, {pipeline_mode = #tpu.pipeline_mode<synchronous>, transform_indices = @transform_8, window_bounds = array<i64: 32, 32>}, {pipeline_mode = #tpu.pipeline_mode<synchronous>, transform_indices = @transform_9, window_bounds = array<i64: 1, 32>}, {pipeline_mode = #tpu.pipeline_mode<synchronous>, transform_indices = @transform_10, window_bounds = array<i64: 1, 32>}, {pipeline_mode = #tpu.pipeline_mode<synchronous>, transform_indices = @transform_11, window_bounds = array<i64: 1, 32>}, {pipeline_mode = #tpu.pipeline_mode<synchronous>, transform_indices = @transform_12, window_bounds = array<i64: 32, 64>}, {pipeline_mode = #tpu.pipeline_mode<synchronous>, transform_indices = @transform_13, window_bounds = array<i64: 1, 64>}, {pipeline_mode = #tpu.pipeline_mode<synchronous>, transform_indices = @transform_14, window_bounds = array<i64: 64, 32>}, {pipeline_mode = #tpu.pipeline_mode<synchronous>, transform_indices = @transform_15, window_bounds = array<i64: 1, 32>}, {pipeline_mode = #tpu.pipeline_mode<synchronous>, transform_indices = @transform_16, window_bounds = array<i64: 1, 32>}, {pipeline_mode = #tpu.pipeline_mode<synchronous>, transform_indices = @transform_17, window_bounds = array<i64: 1, 32>}, {transform_indices = @transform_18, window_bounds = array<i64: 1, 8, 32>}]} {
    %c0 = arith.constant 0 : index
    %c0_0 = arith.constant 0 : index
    %c0_1 = arith.constant 0 : index
    %0 = vector.load %arg1[%c0, %c0_0, %c0_1] : memref<1x8x32xf32, #tpu.memory_space<vmem>>, vector<1x8x32xf32>
    %1 = vector.shape_cast %0 : vector<1x8x32xf32> to vector<8x32xf32>
    %c0_2 = arith.constant 0 : index
    %c0_3 = arith.constant 0 : index
    %c0_4 = arith.constant 0 : index
    %2 = vector.load %arg2[%c0_2, %c0_3, %c0_4] : memref<1x8x8xf32, #tpu.memory_space<vmem>>, vector<1x8x8xf32>
    %3 = vector.shape_cast %2 : vector<1x8x8xf32> to vector<8x8xf32>
    %c0_5 = arith.constant 0 : index
    %c0_6 = arith.constant 0 : index
    %4 = vector.load %arg3[%c0_5, %c0_6] : memref<32x32xf32, #tpu.memory_space<vmem>>, vector<32x32xf32>
    %cst = arith.constant dense<0.000000e+00> : vector<8x32xf32>
    %5 = tpu.matmul %1, %4, %cst {dimension_numbers = #tpu.dot_dimension_numbers<[1], [0], [0], [1], [0, 0, 1, 1], [], []>, precision = #tpu.contract_precision<fp32>} : vector<8x32xf32>, vector<32x32xf32>, vector<8x32xf32> -> vector<8x32xf32>
    %c0_7 = arith.constant 0 : index
    %c0_8 = arith.constant 0 : index
    %6 = vector.load %arg4[%c0_7, %c0_8] : memref<1x32xf32, #tpu.memory_space<vmem>>, vector<1x32xf32>
    %7 = vector.broadcast %6 : vector<1x32xf32> to vector<8x32xf32>
    %8 = arith.addf %5, %7 : vector<8x32xf32>
    %c0_9 = arith.constant 0 : index
    %c0_10 = arith.constant 0 : index
    %9 = vector.load %arg5[%c0_9, %c0_10] : memref<32x32xf32, #tpu.memory_space<vmem>>, vector<32x32xf32>
    %cst_11 = arith.constant dense<0.000000e+00> : vector<8x32xf32>
    %10 = tpu.matmul %1, %9, %cst_11 {dimension_numbers = #tpu.dot_dimension_numbers<[1], [0], [0], [1], [0, 0, 1, 1], [], []>, precision = #tpu.contract_precision<fp32>} : vector<8x32xf32>, vector<32x32xf32>, vector<8x32xf32> -> vector<8x32xf32>
    %c0_12 = arith.constant 0 : index
    %c0_13 = arith.constant 0 : index
    %11 = vector.load %arg6[%c0_12, %c0_13] : memref<1x32xf32, #tpu.memory_space<vmem>>, vector<1x32xf32>
    %12 = vector.broadcast %11 : vector<1x32xf32> to vector<8x32xf32>
    %13 = arith.addf %10, %12 : vector<8x32xf32>
    %c0_14 = arith.constant 0 : index
    %c0_15 = arith.constant 0 : index
    %14 = vector.load %arg7[%c0_14, %c0_15] : memref<32x32xf32, #tpu.memory_space<vmem>>, vector<32x32xf32>
    %cst_16 = arith.constant dense<0.000000e+00> : vector<8x32xf32>
    %15 = tpu.matmul %1, %14, %cst_16 {dimension_numbers = #tpu.dot_dimension_numbers<[1], [0], [0], [1], [0, 0, 1, 1], [], []>, precision = #tpu.contract_precision<fp32>} : vector<8x32xf32>, vector<32x32xf32>, vector<8x32xf32> -> vector<8x32xf32>
    %c0_17 = arith.constant 0 : index
    %c0_18 = arith.constant 0 : index
    %16 = vector.load %arg8[%c0_17, %c0_18] : memref<1x32xf32, #tpu.memory_space<vmem>>, vector<1x32xf32>
    %17 = vector.broadcast %16 : vector<1x32xf32> to vector<8x32xf32>
    %18 = arith.addf %15, %17 : vector<8x32xf32>
    %19 = vector.extract_strided_slice %8 {offsets = [0, 0], sizes = [8, 8], strides = [1, 1]} : vector<8x32xf32> to vector<8x8xf32>
    %20 = vector.extract_strided_slice %13 {offsets = [0, 0], sizes = [8, 8], strides = [1, 1]} : vector<8x32xf32> to vector<8x8xf32>
    %21 = vector.extract_strided_slice %18 {offsets = [0, 0], sizes = [8, 8], strides = [1, 1]} : vector<8x32xf32> to vector<8x8xf32>
    %22 = tpu.transpose %20, [1, 0] : vector<8x8xf32> -> vector<8x8xf32>
    %cst_19 = arith.constant dense<0.000000e+00> : vector<8x8xf32>
    %23 = tpu.matmul %19, %22, %cst_19 {dimension_numbers = #tpu.dot_dimension_numbers<[1], [0], [0], [1], [0, 0, 1, 1], [], []>, precision = #tpu.contract_precision<fp32>} : vector<8x8xf32>, vector<8x8xf32>, vector<8x8xf32> -> vector<8x8xf32>
    %cst_20 = arith.constant 0.353553385 : f32
    %24 = vector.broadcast %cst_20 : f32 to vector<8x8xf32>
    %25 = arith.mulf %23, %24 : vector<8x8xf32>
    %cst_21 = arith.constant 0.000000e+00 : f32
    %26 = vector.broadcast %cst_21 : f32 to vector<8x8xf32>
    %27 = arith.cmpf oeq, %3, %26 : vector<8x8xf32>
    %cst_22 = arith.constant -1.000000e+09 : f32
    %28 = vector.broadcast %cst_22 : f32 to vector<8x8xf32>
    %29 = arith.select %27, %28, %25 : vector<8x8xi1>, vector<8x8xf32>
    %cst_23 = arith.constant dense<0xFF800000> : vector<8xf32>
    %30 = vector.multi_reduction <maximumf>, %29, %cst_23 [1] : vector<8x8xf32> to vector<8xf32>
    %31 = vector.shape_cast %30 : vector<8xf32> to vector<8x1xf32>
    %32 = vector.broadcast %31 : vector<8x1xf32> to vector<8x8xf32>
    %33 = arith.subf %29, %32 : vector<8x8xf32>
    %34 = math.exp %33 : vector<8x8xf32>
    %cst_24 = arith.constant dense<0.000000e+00> : vector<8xf32>
    %35 = vector.multi_reduction <add>, %34, %cst_24 [1] : vector<8x8xf32> to vector<8xf32>
    %36 = vector.shape_cast %35 : vector<8xf32> to vector<8x1xf32>
    %37 = vector.broadcast %36 : vector<8x1xf32> to vector<8x8xf32>
    %38 = arith.divf %34, %37 : vector<8x8xf32>
    %cst_25 = arith.constant dense<0.000000e+00> : vector<8x8xf32>
    %39 = tpu.matmul %38, %21, %cst_25 {dimension_numbers = #tpu.dot_dimension_numbers<[1], [0], [0], [1], [0, 0, 1, 1], [], []>, precision = #tpu.contract_precision<fp32>} : vector<8x8xf32>, vector<8x8xf32>, vector<8x8xf32> -> vector<8x8xf32>
    %c0_26 = arith.constant 0 : index
    %c0_27 = arith.constant 0 : index
    %40 = vector.load %arg20[%c0_26, %c0_27] : memref<8x32xf32, #tpu.memory_space<vmem>>, vector<8x8xf32>
    tpu.vector_store %arg20[%c0_26, %c0_27], %39 {strides = array<i32>} : memref<8x32xf32, #tpu.memory_space<vmem>>, vector<8x8xf32>,
    %41 = vector.extract_strided_slice %8 {offsets = [0, 8], sizes = [8, 8], strides = [1, 1]} : vector<8x32xf32> to vector<8x8xf32>
    %42 = vector.extract_strided_slice %13 {offsets = [0, 8], sizes = [8, 8], strides = [1, 1]} : vector<8x32xf32> to vector<8x8xf32>
    %43 = vector.extract_strided_slice %18 {offsets = [0, 8], sizes = [8, 8], strides = [1, 1]} : vector<8x32xf32> to vector<8x8xf32>
    %44 = tpu.transpose %42, [1, 0] : vector<8x8xf32> -> vector<8x8xf32>
    %cst_28 = arith.constant dense<0.000000e+00> : vector<8x8xf32>
    %45 = tpu.matmul %41, %44, %cst_28 {dimension_numbers = #tpu.dot_dimension_numbers<[1], [0], [0], [1], [0, 0, 1, 1], [], []>, precision = #tpu.contract_precision<fp32>} : vector<8x8xf32>, vector<8x8xf32>, vector<8x8xf32> -> vector<8x8xf32>
    %cst_29 = arith.constant 0.353553385 : f32
    %46 = vector.broadcast %cst_29 : f32 to vector<8x8xf32>
    %47 = arith.mulf %45, %46 : vector<8x8xf32>
    %cst_30 = arith.constant 0.000000e+00 : f32
    %48 = vector.broadcast %cst_30 : f32 to vector<8x8xf32>
    %49 = arith.cmpf oeq, %3, %48 : vector<8x8xf32>
    %cst_31 = arith.constant -1.000000e+09 : f32
    %50 = vector.broadcast %cst_31 : f32 to vector<8x8xf32>
    %51 = arith.select %49, %50, %47 : vector<8x8xi1>, vector<8x8xf32>
    %cst_32 = arith.constant dense<0xFF800000> : vector<8xf32>
    %52 = vector.multi_reduction <maximumf>, %51, %cst_32 [1] : vector<8x8xf32> to vector<8xf32>
    %53 = vector.shape_cast %52 : vector<8xf32> to vector<8x1xf32>
    %54 = vector.broadcast %53 : vector<8x1xf32> to vector<8x8xf32>
    %55 = arith.subf %51, %54 : vector<8x8xf32>
    %56 = math.exp %55 : vector<8x8xf32>
    %cst_33 = arith.constant dense<0.000000e+00> : vector<8xf32>
    %57 = vector.multi_reduction <add>, %56, %cst_33 [1] : vector<8x8xf32> to vector<8xf32>
    %58 = vector.shape_cast %57 : vector<8xf32> to vector<8x1xf32>
    %59 = vector.broadcast %58 : vector<8x1xf32> to vector<8x8xf32>
    %60 = arith.divf %56, %59 : vector<8x8xf32>
    %cst_34 = arith.constant dense<0.000000e+00> : vector<8x8xf32>
    %61 = tpu.matmul %60, %43, %cst_34 {dimension_numbers = #tpu.dot_dimension_numbers<[1], [0], [0], [1], [0, 0, 1, 1], [], []>, precision = #tpu.contract_precision<fp32>} : vector<8x8xf32>, vector<8x8xf32>, vector<8x8xf32> -> vector<8x8xf32>
    %c0_35 = arith.constant 0 : index
    %c8 = arith.constant 8 : index
    %62 = vector.load %arg20[%c0_35, %c8] : memref<8x32xf32, #tpu.memory_space<vmem>>, vector<8x8xf32>
    tpu.vector_store %arg20[%c0_35, %c8], %61 {strides = array<i32>} : memref<8x32xf32, #tpu.memory_space<vmem>>, vector<8x8xf32>,
    %63 = vector.extract_strided_slice %8 {offsets = [0, 16], sizes = [8, 8], strides = [1, 1]} : vector<8x32xf32> to vector<8x8xf32>
    %64 = vector.extract_strided_slice %13 {offsets = [0, 16], sizes = [8, 8], strides = [1, 1]} : vector<8x32xf32> to vector<8x8xf32>
    %65 = vector.extract_strided_slice %18 {offsets = [0, 16], sizes = [8, 8], strides = [1, 1]} : vector<8x32xf32> to vector<8x8xf32>
    %66 = tpu.transpose %64, [1, 0] : vector<8x8xf32> -> vector<8x8xf32>
    %cst_36 = arith.constant dense<0.000000e+00> : vector<8x8xf32>
    %67 = tpu.matmul %63, %66, %cst_36 {dimension_numbers = #tpu.dot_dimension_numbers<[1], [0], [0], [1], [0, 0, 1, 1], [], []>, precision = #tpu.contract_precision<fp32>} : vector<8x8xf32>, vector<8x8xf32>, vector<8x8xf32> -> vector<8x8xf32>
    %cst_37 = arith.constant 0.353553385 : f32
    %68 = vector.broadcast %cst_37 : f32 to vector<8x8xf32>
    %69 = arith.mulf %67, %68 : vector<8x8xf32>
    %cst_38 = arith.constant 0.000000e+00 : f32
    %70 = vector.broadcast %cst_38 : f32 to vector<8x8xf32>
    %71 = arith.cmpf oeq, %3, %70 : vector<8x8xf32>
    %cst_39 = arith.constant -1.000000e+09 : f32
    %72 = vector.broadcast %cst_39 : f32 to vector<8x8xf32>
    %73 = arith.select %71, %72, %69 : vector<8x8xi1>, vector<8x8xf32>
    %cst_40 = arith.constant dense<0xFF800000> : vector<8xf32>
    %74 = vector.multi_reduction <maximumf>, %73, %cst_40 [1] : vector<8x8xf32> to vector<8xf32>
    %75 = vector.shape_cast %74 : vector<8xf32> to vector<8x1xf32>
    %76 = vector.broadcast %75 : vector<8x1xf32> to vector<8x8xf32>
    %77 = arith.subf %73, %76 : vector<8x8xf32>
    %78 = math.exp %77 : vector<8x8xf32>
    %cst_41 = arith.constant dense<0.000000e+00> : vector<8xf32>
    %79 = vector.multi_reduction <add>, %78, %cst_41 [1] : vector<8x8xf32> to vector<8xf32>
    %80 = vector.shape_cast %79 : vector<8xf32> to vector<8x1xf32>
    %81 = vector.broadcast %80 : vector<8x1xf32> to vector<8x8xf32>
    %82 = arith.divf %78, %81 : vector<8x8xf32>
    %cst_42 = arith.constant dense<0.000000e+00> : vector<8x8xf32>
    %83 = tpu.matmul %82, %65, %cst_42 {dimension_numbers = #tpu.dot_dimension_numbers<[1], [0], [0], [1], [0, 0, 1, 1], [], []>, precision = #tpu.contract_precision<fp32>} : vector<8x8xf32>, vector<8x8xf32>, vector<8x8xf32> -> vector<8x8xf32>
    %c0_43 = arith.constant 0 : index
    %c16 = arith.constant 16 : index
    %84 = vector.load %arg20[%c0_43, %c16] : memref<8x32xf32, #tpu.memory_space<vmem>>, vector<8x8xf32>
    tpu.vector_store %arg20[%c0_43, %c16], %83 {strides = array<i32>} : memref<8x32xf32, #tpu.memory_space<vmem>>, vector<8x8xf32>,
    %85 = vector.extract_strided_slice %8 {offsets = [0, 24], sizes = [8, 8], strides = [1, 1]} : vector<8x32xf32> to vector<8x8xf32>
    %86 = vector.extract_strided_slice %13 {offsets = [0, 24], sizes = [8, 8], strides = [1, 1]} : vector<8x32xf32> to vector<8x8xf32>
    %87 = vector.extract_strided_slice %18 {offsets = [0, 24], sizes = [8, 8], strides = [1, 1]} : vector<8x32xf32> to vector<8x8xf32>
    %88 = tpu.transpose %86, [1, 0] : vector<8x8xf32> -> vector<8x8xf32>
    %cst_44 = arith.constant dense<0.000000e+00> : vector<8x8xf32>
    %89 = tpu.matmul %85, %88, %cst_44 {dimension_numbers = #tpu.dot_dimension_numbers<[1], [0], [0], [1], [0, 0, 1, 1], [], []>, precision = #tpu.contract_precision<fp32>} : vector<8x8xf32>, vector<8x8xf32>, vector<8x8xf32> -> vector<8x8xf32>
    %cst_45 = arith.constant 0.353553385 : f32
    %90 = vector.broadcast %cst_45 : f32 to vector<8x8xf32>
    %91 = arith.mulf %89, %90 : vector<8x8xf32>
    %cst_46 = arith.constant 0.000000e+00 : f32
    %92 = vector.broadcast %cst_46 : f32 to vector<8x8xf32>
    %93 = arith.cmpf oeq, %3, %92 : vector<8x8xf32>
    %cst_47 = arith.constant -1.000000e+09 : f32
    %94 = vector.broadcast %cst_47 : f32 to vector<8x8xf32>
    %95 = arith.select %93, %94, %91 : vector<8x8xi1>, vector<8x8xf32>
    %cst_48 = arith.constant dense<0xFF800000> : vector<8xf32>
    %96 = vector.multi_reduction <maximumf>, %95, %cst_48 [1] : vector<8x8xf32> to vector<8xf32>
    %97 = vector.shape_cast %96 : vector<8xf32> to vector<8x1xf32>
    %98 = vector.broadcast %97 : vector<8x1xf32> to vector<8x8xf32>
    %99 = arith.subf %95, %98 : vector<8x8xf32>
    %100 = math.exp %99 : vector<8x8xf32>
    %cst_49 = arith.constant dense<0.000000e+00> : vector<8xf32>
    %101 = vector.multi_reduction <add>, %100, %cst_49 [1] : vector<8x8xf32> to vector<8xf32>
    %102 = vector.shape_cast %101 : vector<8xf32> to vector<8x1xf32>
    %103 = vector.broadcast %102 : vector<8x1xf32> to vector<8x8xf32>
    %104 = arith.divf %100, %103 : vector<8x8xf32>
    %cst_50 = arith.constant dense<0.000000e+00> : vector<8x8xf32>
    %105 = tpu.matmul %104, %87, %cst_50 {dimension_numbers = #tpu.dot_dimension_numbers<[1], [0], [0], [1], [0, 0, 1, 1], [], []>, precision = #tpu.contract_precision<fp32>} : vector<8x8xf32>, vector<8x8xf32>, vector<8x8xf32> -> vector<8x8xf32>
    %c0_51 = arith.constant 0 : index
    %c24 = arith.constant 24 : index
    %106 = vector.load %arg20[%c0_51, %c24] : memref<8x32xf32, #tpu.memory_space<vmem>>, vector<8x8xf32>
    tpu.vector_store %arg20[%c0_51, %c24], %105 {strides = array<i32>} : memref<8x32xf32, #tpu.memory_space<vmem>>, vector<8x8xf32>,
    %c0_52 = arith.constant 0 : index
    %c0_53 = arith.constant 0 : index
    %107 = vector.load %arg20[%c0_52, %c0_53] : memref<8x32xf32, #tpu.memory_space<vmem>>, vector<8x32xf32>
    %c0_54 = arith.constant 0 : index
    %c0_55 = arith.constant 0 : index
    %108 = vector.load %arg9[%c0_54, %c0_55] : memref<32x32xf32, #tpu.memory_space<vmem>>, vector<32x32xf32>
    %cst_56 = arith.constant dense<0.000000e+00> : vector<8x32xf32>
    %109 = tpu.matmul %107, %108, %cst_56 {dimension_numbers = #tpu.dot_dimension_numbers<[1], [0], [0], [1], [0, 0, 1, 1], [], []>, precision = #tpu.contract_precision<fp32>} : vector<8x32xf32>, vector<32x32xf32>, vector<8x32xf32> -> vector<8x32xf32>
    %c0_57 = arith.constant 0 : index
    %c0_58 = arith.constant 0 : index
    %110 = vector.load %arg10[%c0_57, %c0_58] : memref<1x32xf32, #tpu.memory_space<vmem>>, vector<1x32xf32>
    %111 = vector.broadcast %110 : vector<1x32xf32> to vector<8x32xf32>
    %112 = arith.addf %109, %111 : vector<8x32xf32>
    %113 = arith.addf %1, %112 : vector<8x32xf32>
    %c0_59 = arith.constant 0 : index
    %c0_60 = arith.constant 0 : index
    %114 = vector.load %arg11[%c0_59, %c0_60] : memref<1x32xf32, #tpu.memory_space<vmem>>, vector<1x32xf32>
    %c0_61 = arith.constant 0 : index
    %c0_62 = arith.constant 0 : index
    %115 = vector.load %arg12[%c0_61, %c0_62] : memref<1x32xf32, #tpu.memory_space<vmem>>, vector<1x32xf32>
    %cst_63 = arith.constant dense<0.000000e+00> : vector<8xf32>
    %116 = vector.multi_reduction <add>, %113, %cst_63 [1] : vector<8x32xf32> to vector<8xf32>
    %117 = vector.shape_cast %116 : vector<8xf32> to vector<8x1xf32>
    %cst_64 = arith.constant 3.200000e+01 : f32
    %118 = vector.broadcast %cst_64 : f32 to vector<8x1xf32>
    %119 = arith.divf %117, %118 : vector<8x1xf32>
    %120 = vector.broadcast %119 : vector<8x1xf32> to vector<8x32xf32>
    %121 = arith.subf %113, %120 : vector<8x32xf32>
    %122 = arith.mulf %121, %121 : vector<8x32xf32>
    %cst_65 = arith.constant dense<0.000000e+00> : vector<8xf32>
    %123 = vector.multi_reduction <add>, %122, %cst_65 [1] : vector<8x32xf32> to vector<8xf32>
    %124 = vector.shape_cast %123 : vector<8xf32> to vector<8x1xf32>
    %cst_66 = arith.constant 3.100000e+01 : f32
    %125 = vector.broadcast %cst_66 : f32 to vector<8x1xf32>
    %126 = arith.divf %124, %125 : vector<8x1xf32>
    %127 = math.sqrt %126 : vector<8x1xf32>
    %cst_67 = arith.constant 9.99999971E-10 : f32
    %128 = vector.broadcast %cst_67 : f32 to vector<8x1xf32>
    %129 = arith.addf %127, %128 : vector<8x1xf32>
    %130 = vector.broadcast %129 : vector<8x1xf32> to vector<8x32xf32>
    %131 = arith.divf %121, %130 : vector<8x32xf32>
    %132 = vector.broadcast %114 : vector<1x32xf32> to vector<8x32xf32>
    %133 = arith.mulf %132, %131 : vector<8x32xf32>
    %134 = vector.broadcast %115 : vector<1x32xf32> to vector<8x32xf32>
    %135 = arith.addf %133, %134 : vector<8x32xf32>
    %c0_68 = arith.constant 0 : index
    %c0_69 = arith.constant 0 : index
    %136 = vector.load %arg13[%c0_68, %c0_69] : memref<32x64xf32, #tpu.memory_space<vmem>>, vector<32x64xf32>
    %cst_70 = arith.constant dense<0.000000e+00> : vector<8x64xf32>
    %137 = tpu.matmul %135, %136, %cst_70 {dimension_numbers = #tpu.dot_dimension_numbers<[1], [0], [0], [1], [0, 0, 1, 1], [], []>, precision = #tpu.contract_precision<fp32>} : vector<8x32xf32>, vector<32x64xf32>, vector<8x64xf32> -> vector<8x64xf32>
    %c0_71 = arith.constant 0 : index
    %c0_72 = arith.constant 0 : index
    %138 = vector.load %arg14[%c0_71, %c0_72] : memref<1x64xf32, #tpu.memory_space<vmem>>, vector<1x64xf32>
    %139 = vector.broadcast %138 : vector<1x64xf32> to vector<8x64xf32>
    %140 = arith.addf %137, %139 : vector<8x64xf32>
    %cst_73 = arith.constant 0.000000e+00 : f32
    %141 = vector.broadcast %cst_73 : f32 to vector<8x64xf32>
    %142 = arith.maximumf %140, %141 : vector<8x64xf32>
    %c0_74 = arith.constant 0 : index
    %c0_75 = arith.constant 0 : index
    %143 = vector.load %arg15[%c0_74, %c0_75] : memref<64x32xf32, #tpu.memory_space<vmem>>, vector<64x32xf32>
    %cst_76 = arith.constant dense<0.000000e+00> : vector<8x32xf32>
    %144 = tpu.matmul %142, %143, %cst_76 {dimension_numbers = #tpu.dot_dimension_numbers<[1], [0], [0], [1], [0, 0, 1, 1], [], []>, precision = #tpu.contract_precision<fp32>} : vector<8x64xf32>, vector<64x32xf32>, vector<8x32xf32> -> vector<8x32xf32>
    %c0_77 = arith.constant 0 : index
    %c0_78 = arith.constant 0 : index
    %145 = vector.load %arg16[%c0_77, %c0_78] : memref<1x32xf32, #tpu.memory_space<vmem>>, vector<1x32xf32>
    %146 = vector.broadcast %145 : vector<1x32xf32> to vector<8x32xf32>
    %147 = arith.addf %144, %146 : vector<8x32xf32>
    %148 = arith.addf %135, %147 : vector<8x32xf32>
    %c0_79 = arith.constant 0 : index
    %c0_80 = arith.constant 0 : index
    %149 = vector.load %arg17[%c0_79, %c0_80] : memref<1x32xf32, #tpu.memory_space<vmem>>, vector<1x32xf32>
    %c0_81 = arith.constant 0 : index
    %c0_82 = arith.constant 0 : index
    %150 = vector.load %arg18[%c0_81, %c0_82] : memref<1x32xf32, #tpu.memory_space<vmem>>, vector<1x32xf32>
    %cst_83 = arith.constant dense<0.000000e+00> : vector<8xf32>
    %151 = vector.multi_reduction <add>, %148, %cst_83 [1] : vector<8x32xf32> to vector<8xf32>
    %152 = vector.shape_cast %151 : vector<8xf32> to vector<8x1xf32>
    %cst_84 = arith.constant 3.200000e+01 : f32
    %153 = vector.broadcast %cst_84 : f32 to vector<8x1xf32>
    %154 = arith.divf %152, %153 : vector<8x1xf32>
    %155 = vector.broadcast %154 : vector<8x1xf32> to vector<8x32xf32>
    %156 = arith.subf %148, %155 : vector<8x32xf32>
    %157 = arith.mulf %156, %156 : vector<8x32xf32>
    %cst_85 = arith.constant dense<0.000000e+00> : vector<8xf32>
    %158 = vector.multi_reduction <add>, %157, %cst_85 [1] : vector<8x32xf32> to vector<8xf32>
    %159 = vector.shape_cast %158 : vector<8xf32> to vector<8x1xf32>
    %cst_86 = arith.constant 3.100000e+01 : f32
    %160 = vector.broadcast %cst_86 : f32 to vector<8x1xf32>
    %161 = arith.divf %159, %160 : vector<8x1xf32>
    %162 = math.sqrt %161 : vector<8x1xf32>
    %cst_87 = arith.constant 9.99999971E-10 : f32
    %163 = vector.broadcast %cst_87 : f32 to vector<8x1xf32>
    %164 = arith.addf %162, %163 : vector<8x1xf32>
    %165 = vector.broadcast %164 : vector<8x1xf32> to vector<8x32xf32>
    %166 = arith.divf %156, %165 : vector<8x32xf32>
    %167 = vector.broadcast %149 : vector<1x32xf32> to vector<8x32xf32>
    %168 = arith.mulf %167, %166 : vector<8x32xf32>
    %169 = vector.broadcast %150 : vector<1x32xf32> to vector<8x32xf32>
    %170 = arith.addf %168, %169 : vector<8x32xf32>
    %c0_88 = arith.constant 0 : index
    %c0_89 = arith.constant 0 : index
    %c0_90 = arith.constant 0 : index
    %171 = vector.load %arg19[%c0_88, %c0_89, %c0_90] : memref<1x8x32xf32, #tpu.memory_space<vmem>>, vector<1x8x32xf32>
    %172 = vector.shape_cast %171 : vector<1x8x32xf32> to vector<8x32xf32>
    %173 = vector.shape_cast %170 : vector<8x32xf32> to vector<1x8x32xf32>
    tpu.vector_store %arg19[%c0_88, %c0_89, %c0_90], %173 {strides = array<i32>} : memref<1x8x32xf32, #tpu.memory_space<vmem>>, vector<1x8x32xf32>,
    return
  }
  func.func @transform_0(%arg0: i32) -> (i32, i32, i32) {
    %c0_i32 = arith.constant 0 : i32
    %c0_i32_0 = arith.constant 0 : i32
    %c0_i32_1 = arith.constant 0 : i32
    return %arg0, %c0_i32, %c0_i32_0 : i32, i32, i32
  }
  func.func @transform_1(%arg0: i32) -> (i32, i32, i32) {
    %c0_i32 = arith.constant 0 : i32
    %c0_i32_0 = arith.constant 0 : i32
    %c0_i32_1 = arith.constant 0 : i32
    return %arg0, %c0_i32, %c0_i32_0 : i32, i32, i32
  }
  func.func @transform_2(%arg0: i32) -> (i32, i32) {
    %c0_i32 = arith.constant 0 : i32
    %c0_i32_0 = arith.constant 0 : i32
    %c0_i32_1 = arith.constant 0 : i32
    return %c0_i32, %c0_i32_0 : i32, i32
  }
  func.func @transform_3(%arg0: i32) -> (i32, i32) {
    %c0_i32 = arith.constant 0 : i32
    %c0_i32_0 = arith.constant 0 : i32
    %c0_i32_1 = arith.constant 0 : i32
    return %c0_i32, %c0_i32_0 : i32, i32
  }
  func.func @transform_4(%arg0: i32) -> (i32, i32) {
    %c0_i32 = arith.constant 0 : i32
    %c0_i32_0 = arith.constant 0 : i32
    %c0_i32_1 = arith.constant 0 : i32
    return %c0_i32, %c0_i32_0 : i32, i32
  }
  func.func @transform_5(%arg0: i32) -> (i32, i32) {
    %c0_i32 = arith.constant 0 : i32
    %c0_i32_0 = arith.constant 0 : i32
    %c0_i32_1 = arith.constant 0 : i32
    return %c0_i32, %c0_i32_0 : i32, i32
  }
  func.func @transform_6(%arg0: i32) -> (i32, i32) {
    %c0_i32 = arith.constant 0 : i32
    %c0_i32_0 = arith.constant 0 : i32
    %c0_i32_1 = arith.constant 0 : i32
    return %c0_i32, %c0_i32_0 : i32, i32
  }
  func.func @transform_7(%arg0: i32) -> (i32, i32) {
    %c0_i32 = arith.constant 0 : i32
    %c0_i32_0 = arith.constant 0 : i32
    %c0_i32_1 = arith.constant 0 : i32
    return %c0_i32, %c0_i32_0 : i32, i32
  }
  func.func @transform_8(%arg0: i32) -> (i32, i32) {
    %c0_i32 = arith.constant 0 : i32
    %c0_i32_0 = arith.constant 0 : i32
    %c0_i32_1 = arith.constant 0 : i32
    return %c0_i32, %c0_i32_0 : i32, i32
  }
  func.func @transform_9(%arg0: i32) -> (i32, i32) {
    %c0_i32 = arith.constant 0 : i32
    %c0_i32_0 = arith.constant 0 : i32
    %c0_i32_1 = arith.constant 0 : i32
    return %c0_i32, %c0_i32_0 : i32, i32
  }
  func.func @transform_10(%arg0: i32) -> (i32, i32) {
    %c0_i32 = arith.constant 0 : i32
    %c0_i32_0 = arith.constant 0 : i32
    %c0_i32_1 = arith.constant 0 : i32
    return %c0_i32, %c0_i32_0 : i32, i32
  }
  func.func @transform_11(%arg0: i32) -> (i32, i32) {
    %c0_i32 = arith.constant 0 : i32
    %c0_i32_0 = arith.constant 0 : i32
    %c0_i32_1 = arith.constant 0 : i32
    return %c0_i32, %c0_i32_0 : i32, i32
  }
  func.func @transform_12(%arg0: i32) -> (i32, i32) {
    %c0_i32 = arith.constant 0 : i32
    %c0_i32_0 = arith.constant 0 : i32
    %c0_i32_1 = arith.constant 0 : i32
    return %c0_i32, %c0_i32_0 : i32, i32
  }
  func.func @transform_13(%arg0: i32) -> (i32, i32) {
    %c0_i32 = arith.constant 0 : i32
    %c0_i32_0 = arith.constant 0 : i32
    %c0_i32_1 = arith.constant 0 : i32
    return %c0_i32, %c0_i32_0 : i32, i32
  }
  func.func @transform_14(%arg0: i32) -> (i32, i32) {
    %c0_i32 = arith.constant 0 : i32
    %c0_i32_0 = arith.constant 0 : i32
    %c0_i32_1 = arith.constant 0 : i32
    return %c0_i32, %c0_i32_0 : i32, i32
  }
  func.func @transform_15(%arg0: i32) -> (i32, i32) {
    %c0_i32 = arith.constant 0 : i32
    %c0_i32_0 = arith.constant 0 : i32
    %c0_i32_1 = arith.constant 0 : i32
    return %c0_i32, %c0_i32_0 : i32, i32
  }
  func.func @transform_16(%arg0: i32) -> (i32, i32) {
    %c0_i32 = arith.constant 0 : i32
    %c0_i32_0 = arith.constant 0 : i32
    %c0_i32_1 = arith.constant 0 : i32
    return %c0_i32, %c0_i32_0 : i32, i32
  }
  func.func @transform_17(%arg0: i32) -> (i32, i32) {
    %c0_i32 = arith.constant 0 : i32
    %c0_i32_0 = arith.constant 0 : i32
    %c0_i32_1 = arith.constant 0 : i32
    return %c0_i32, %c0_i32_0 : i32, i32
  }
  func.func @transform_18(%arg0: i32) -> (i32, i32, i32) {
    %c0_i32 = arith.constant 0 : i32
    %c0_i32_0 = arith.constant 0 : i32
    %c0_i32_1 = arith.constant 0 : i32
    return %arg0, %c0_i32, %c0_i32_0 : i32, i32, i32
  }
}

</mosaic_0001>

<bundles_post_ra>
// kernel: tpu_custom_call.1
= control target key start
LH: loop header
LB: loop body
LE: loop exit
PB: predicated region body
PF: predicated region fallthrough
CT: control target
= control target key end

     0   :  { %s10197_s0 = inlined_call_operand.hbm [shape: f32[2,8,32], index: 0, kind: input, shape index: {}]   ;;  %s10198_s1 = inlined_call_operand.hbm [shape: f32[2,8,8], index: 1, kind: input, shape index: {}]   ;;  %s10199_s2 = inlined_call_operand.vmem [shape: f32[32,32], index: 2, kind: input, shape index: {}]   ;;  %s10200_s3 = inlined_call_operand.vmem [shape: f32[1,32], index: 3, kind: input, shape index: {}]   ;;  %s10201_s4 = inlined_call_operand.vmem [shape: f32[32,32], index: 4, kind: input, shape index: {}]   ;;  %s10202_s5 = inlined_call_operand.vmem [shape: f32[1,32], index: 5, kind: input, shape index: {}]   ;;  %s10203_s6 = inlined_call_operand.vmem [shape: f32[32,32], index: 6, kind: input, shape index: {}]   ;;  %s10204_s7 = inlined_call_operand.vmem [shape: f32[1,32], index: 7, kind: input, shape index: {}]   ;;  %s10205_s8 = inlined_call_operand.hbm [shape: f32[32,32], index: 8, kind: input, shape index: {}]   ;;  %s10206_s9 = inlined_call_operand.vmem [shape: f32[1,32], index: 9, kind: input, shape index: {}]   ;;  %s10207_s10 = inlined_call_operand.vmem [shape: f32[1,32], index: 10, kind: input, shape index: {}]   ;;  %s10208_s11 = inlined_call_operand.vmem [shape: f32[1,32], index: 11, kind: input, shape index: {}]   ;;  %s10209_s12 = inlined_call_operand.hbm [shape: f32[32,64], index: 12, kind: input, shape index: {}]   ;;  %s10210_s13 = inlined_call_operand.vmem [shape: f32[1,64], index: 13, kind: input, shape index: {}]   ;;  %s10211_s14 = inlined_call_operand.vmem [shape: f32[64,32], index: 14, kind: input, shape index: {}]   ;;  %s10212_s15 = inlined_call_operand.vmem [shape: f32[1,32], index: 15, kind: input, shape index: {}]   ;;  %s10213_s16 = inlined_call_operand.vmem [shape: f32[1,32], index: 16, kind: input, shape index: {}]   ;;  %s10214_s17 = inlined_call_operand.vmem [shape: f32[1,32], index: 17, kind: input, shape index: {}]   ;;  %s10215_s18 = inlined_call_operand.hbm [shape: f32[2,8,32], index: 18, kind: output, shape index: {}]  }
   0x1   :  { %10232 = sst [smem:[#allocation23_spill]] %s10197_s0 }
   0x2   :  { %10233 = sst [smem:[#allocation24_spill]] %s10198_s1 }
   0x3   :  { %10234 = sst [smem:[#allocation25_spill]] %s10199_s2 }
   0x4   :  { %10235 = sst [smem:[#allocation26_spill]] %s10200_s3 }
   0x5   :  { %10236 = sst [smem:[#allocation27_spill]] %s10201_s4 }
   0x6   :  { %10237 = sst [smem:[#allocation28_spill]] %s10205_s8 }
   0x7   :  { %10238 = sst [smem:[#allocation29_spill]] %s10209_s12 }
   0x8   :  { %10239 = sst [smem:[#allocation30_spill]] %s10210_s13 }
   0x9   :  { %10240 = sst [smem:[#allocation31_spill]] %s10211_s14 }
   0xa   :  { %10241 = sst [smem:[#allocation32_spill]] %s10212_s15 }
   0xb   :  { %10242 = sst [smem:[#allocation33_spill]] %s10213_s16 }
   0xc   :  { %10243 = sst [smem:[#allocation34_spill]] %s10214_s17 }
   0xd   :  { %10244 = sst [smem:[#allocation35_spill]] %s10215_s18 }
   0xe   :  { %23 = vsyncpa [#allocation4], 0 }
   0xf   :  { %25 = vsyncpa [#allocation4 + $0x1], 0 }
  0x10   :  { %26 = vsyncpa [#allocation7], 0 }
  0x11   :  { %28 = vsyncpa [#allocation7 + $0x1], 0 }
  0x12   :  { %29 = vsyncpa [#allocation10], 0 }
  0x13   :  { %30 = vsyncpa [#allocation5], 0 }
  0x14   :  { %32 = vsyncpa [#allocation5 + $0x1], 0  ;;  %s9019_s27 = smov 0   ;;  %s9021_s28 = smov 0  }
  0x15   :  { %s9023_s29 = smov 0   ;;  %s9025_s30 = smov 0  }
  0x16 LB: > { %10245 = sst [smem:[#allocation17_spill]] %s8895_s27  ;;  %s9040_s0 = sadd.s32 4294967295, %s8907_s30   ;;  %s8907_s30 = sphi %s9025_s30, %s10284_s30   ;;  %s8903_s29 = sphi %s9023_s29, %s10286_s29   ;;  %s8899_s28 = sphi %s9021_s28, %s10288_s28   ;;  %s8895_s27 = sphi %s9019_s27, %s10287_s27  }
  0x17   : > { %10246 = sst [smem:[#allocation18_spill]] %s8903_s29  ;;  %s7603_s19 = sadd.s32 4294967294, %s8907_s30  }
  0x18   : > { %p58_p0 = scmp.ne.s32.totalorder %s8899_s28, %s8895_s27  ;;  %p10221_p1 = scmp.eq.s32.totalorder %s9040_s0, 0 }
  0x19   : > { %p450_p3 = scmp.eq.s32.totalorder %s7603_s19, 1  ;;  %p7604_p5 = scmp.ge.s32.totalorder %s8907_s30, 1 }
  0x1a   : > { %p9049_p4 = por %p10221_p1, %p58_p0  ;;  %p457_p7 = scmp.lt.s32.totalorder %s8907_s30, 3 }
  0x1b   : > { %p9054_p6 = por %p450_p3, %p58_p0  ;;  %s8909_s22 = smov [#allocation8]  }
  0x1c   : > { %s10247_s1 = scalar_select %p9049_p4, 1, 0 }
  0x1d   : > { %s10248_s20 = scalar_select %p9054_p6, 1, 0 }
  0x1e   : > { %p9059_p8 = pnand %p7604_p5, %p457_p7  ;;  %s487_s2 = sshll.u32 %s8909_s22, 4  ;;  %s488_s2 = int_to_ptr.vmem [resolvable:$true] %s487_s2 }
  0x1f   : > { %10249 = sst [smem:[#allocation19_spill]] %s10248_s20  ;;  %s8910_s24 = smov [#allocation9]  }
  0x20   : > { %s10250_s21 = scalar_select %p9059_p8, 1, 0 }
  0x21   : > { %p8630_p9 = pneg %p9059_p8  ;;  %s509_s25 = sshll.u32 %s8910_s24, 4  ;;  %s510_s25 = int_to_ptr.vmem [resolvable:$true] %s509_s25 }
  0x22   : > { %s8734_s26 = scalar_lea.vmem %s488_s2, 512  ;;  %p8742_p5 = scmp.lt.s32.totalorder %s488_s2, %s488_s2 }
  0x23   : > { %p9068_p11 = pnand %p8630_p9, %p10221_p1  ;;  %p8735_p13 = scmp.ne.s32.totalorder %s488_s2, %s8734_s26 }
  0x24   : > { %p8743_p7 = scmp.lt.s32.totalorder %s8734_s26, %s8734_s26 }
  0x25   : > { %p8725_p12 = pneg %p9068_p11 }
  0x26   : > { %p8744_p10 = por %p8743_p7, %p8742_p5 }
  0x27   : > { %p8737_p0 = pnand %p8735_p13, %p8725_p12 }
  0x29   : > { %p8738_p3 = pneg %p8737_p0 }
  0x2b   : > { %p8745_p9 = pnand %p8744_p10, %p8738_p3 }
  0x2d   : > { %8748 = shalt.err (!%p8745_p9)
}
  0x2e   : > { %s8911_s19 = smov 128   ;;  %s8912_s22 = smov 8  }
  0x2f   : > { %s10252_s8 = sld [smem:[#allocation28_spill]]  ;;  %s8760_s27 = scalar_lea.vmem %s510_s25, 512 }
  0x30   : > { %p8761_p1 = scmp.ne.s32.totalorder %s510_s25, %s8760_s27  ;;  %p8768_p2 = scmp.lt.s32.totalorder %s510_s25, %s510_s25 }
  0x31   : > { %p8769_p6 = scmp.lt.s32.totalorder %s8760_s27, %s8760_s27 }
  0x32   : > { %p8763_p13 = pnand %p8761_p1, %p8725_p12 }
  0x33   : > { %p8770_p5 = por %p8769_p6, %p8768_p2 }
  0x34   : > { %p8764_p0 = pneg %p8763_p13 }
  0x35   : > { %8633 = dma.hbm_to_vmem [thread:$0]  (!%p9068_p11), %s10252_s8, 512, %s488_s2, [#allocation7], %s8911_s19, %s8911_s19, %s8912_s22  }
  0x36   : > { %p8771_p10 = pnand %p8770_p5, %p8764_p0 }
  0x38   : > { %8774 = shalt.err (!%p8771_p10)
}
  0x39   : > { %s10253_s12 = sld [smem:[#allocation29_spill]]  ;;  %s9091_s27 = sadd.s32 1, %s8907_s30  }
  0x3a   : > { %10254 = sst [smem:[#allocation20_spill]] %s9091_s27  ;;  %s45_s20 = sadd.s32 1, %s8903_s29 }
  0x3b   : > { %s42_s2 = ssub.s32 %s8907_s30, %s9091_s27  ;;  %p52_p1 = scmp.ne.s32.totalorder %s8903_s29, %s8899_s28 }
  0x3c   : > { %p43_p2 = scmp.eq.s32.totalorder %s42_s2, 0  ;;  %p53_p6 = scmp.eq.s32.totalorder %s8907_s30, 0 }
  0x3d   : > { %p10255_p12 = scmp.eq.s32.totalorder %s9040_s0, 1  ;;  %p8650_p7 = scmp.lt.s32.totalorder %s8907_s30, 2 }
  0x3e   : > { %s9107_s23 = scalar_select %p43_p2, %s8903_s29, %s45_s20  }
  0x3f   : > { %8636 = dma.hbm_to_vmem [thread:$0]  (!%p9068_p11), %s10253_s12, 512, %s510_s25, [#allocation10], %s8911_s19, %s8911_s19, %s8912_s22  }
  0x40   : > { %p9101_p3 = por %p10255_p12, %p52_p1  ;;  %10258 = sst [smem:[#allocation22_spill]] %s9107_s23 }
  0x41   : > { %p54_p9 = por %p53_p6, %p52_p1  ;;  %s538_s24 = sand.u32 1, %s8903_s29  }
  0x42   : > { %s10256_s18 = scalar_select %p9101_p3, 1, 0 }
  0x43   : > { %s9110_s25 = sshll.u32 %s538_s24, 3  ;;  %s7609_s19 = sshll.u32 %s8907_s30, 7 }
  0x44   : > { %10257 = sst [smem:[#allocation21_spill]] %s10256_s18  ;;  %s542_s2 = scalar_lea.vmem [#allocation3], %s9110_s25 }
  0x45   : > { %s10259_s8 = sld [smem:[#allocation23_spill]]  ;;  %s549_s27 = sshll.u32 %s542_s2, 4  ;;  %s9119_s27 = int_to_ptr.vmem [resolvable:$true] %s549_s27 }
  0x46   : > { %p9121_p11 = pnand %p8650_p7, %p54_p9  ;;  %s10261_s17 = sld [smem:[#allocation24_spill]] }
  0x47   : > { %s556_s22 = sand.u32 1, %s8907_s30   ;;  %s539_s26 = scalar_lea.sflag [#allocation4], %s538_s24 }
  0x48   : > { %p8777_p0 = pneg %p9121_p11 }
  0x4b   : > { %s9116_s12 = scalar_lea.hbm %s10259_s8, %s7609_s19  ;;  %s8780_s13 = scalar_lea.hbm %s10259_s8, 256 }
  0x4c   : > { %s9128_s16 = scalar_lea.hbm %s10261_s17, %s7609_s19  ;;  %s8775_s18 = scalar_lea.hbm %s9116_s12, 128 }
  0x4d   : > { %p8776_p13 = scmp.ne.s32.totalorder %s9116_s12, %s8775_s18  ;;  %p8781_p1 = scmp.lt.s32.totalorder %s9116_s12, %s10259_s8 }
  0x4e   : > { %p8782_p2 = scmp.lt.s32.totalorder %s8780_s13, %s8775_s18 }
  0x4f   : > { %p8778_p5 = pnand %p8777_p0, %p8776_p13 }
  0x50   : > { %p8783_p6 = por %p8782_p2, %p8781_p1 }
  0x51   : > { %p8779_p10 = pneg %p8778_p5 }
  0x53   : > { %p8784_p12 = pnand %p8783_p6, %p8779_p10 }
  0x55   : > { %8787 = shalt.err (!%p8784_p12)
}
  0x56   : > { %s8788_s23 = scalar_lea.vmem %s9119_s27, 128  ;;  %s8913_s15 = smov [#allocation3]  }
  0x57   : > { %p8789_p7 = scmp.ne.s32.totalorder %s9119_s27, %s8788_s23  ;;  %s8793_s24 = sshll.u32 %s8913_s15, 4  ;;  %s8794_s24 = int_to_ptr.vmem [resolvable:$false] %s8793_s24 }
  0x58   : > { %s8795_s19 = scalar_lea.vmem %s8794_s24, 256  ;;  %p8796_p5 = scmp.lt.s32.totalorder %s9119_s27, %s8794_s24 }
  0x59   : > { %p8791_p9 = pnand %p8789_p7, %p8777_p0  ;;  %p8797_p3 = scmp.lt.s32.totalorder %s8795_s19, %s8788_s23 }
  0x5b   : > { %p8792_p13 = pneg %p8791_p9  ;;  %p8798_p4 = por %p8797_p3, %p8796_p5 }
  0x5d   : > { %p8799_p1 = pnand %p8798_p4, %p8792_p13 }
  0x5f   : > { %8802 = shalt.err (!%p8799_p1)
}
  0x60   : > { %8640 = dma.hbm_to_vmem [thread:$0]  (!%p9121_p11), %s9116_s12, 128, %s9119_s27, %s539_s26  }
  0x61   : > { %s560_s13 = scalar_lea.vmem [#allocation6], %s9110_s25  ;;  %s557_s18 = scalar_lea.sflag [#allocation7], %s556_s22 }
  0x62   : > { %s567_s14 = sshll.u32 %s560_s13, 4  ;;  %s8803_s2 = scalar_lea.hbm %s9128_s16, 128  ;;  %s568_s14 = int_to_ptr.vmem [resolvable:$true] %s567_s14 }
  0x63   : > { %p8804_p3 = scmp.ne.s32.totalorder %s9128_s16, %s8803_s2  ;;  %s8808_s15 = scalar_lea.hbm %s10261_s17, 256 }
  0x64   : > { %p8809_p2 = scmp.lt.s32.totalorder %s9128_s16, %s10261_s17  ;;  %p8810_p6 = scmp.lt.s32.totalorder %s8808_s15, %s8803_s2 }
  0x65   : > { %p8806_p4 = pnand %p8804_p3, %p8777_p0 }
  0x66   : > { %p8811_p12 = por %p8810_p6, %p8809_p2 }
  0x67   : > { %p8807_p10 = pneg %p8806_p4 }
  0x69   : > { %p8812_p7 = pnand %p8811_p12, %p8807_p10 }
  0x6b   : > { %8815 = shalt.err (!%p8812_p7)
}
  0x6c   : > { %s8816_s12 = scalar_lea.vmem %s568_s14, 128  ;;  %s8914_s27 = smov [#allocation6]  }
  0x6d   : > { %p8817_p9 = scmp.ne.s32.totalorder %s568_s14, %s8816_s12  ;;  %s8821_s25 = sshll.u32 %s8914_s27, 4  ;;  %s8822_s25 = int_to_ptr.vmem [resolvable:$false] %s8821_s25 }
  0x6e   : > { %s8823_s22 = scalar_lea.vmem %s8822_s25, 256  ;;  %p8824_p1 = scmp.lt.s32.totalorder %s568_s14, %s8822_s25 }
  0x6f   : > { %p8819_p13 = pnand %p8817_p9, %p8777_p0  ;;  %p8825_p3 = scmp.lt.s32.totalorder %s8823_s22, %s8816_s12 }
  0x71   : > { %p8820_p5 = pneg %p8819_p13  ;;  %p8826_p4 = por %p8825_p3, %p8824_p1 }
  0x73   : > { %p8827_p8 = pnand %p8826_p4, %p8820_p5 }
  0x75   : > { %8830 = shalt.err (!%p8827_p8)
}
  0x76   : > { %8643 = dma.hbm_to_vmem [thread:$0]  (!%p9121_p11), %s9128_s16, 128, %s568_s14, %s557_s18  }
  0x77   : > { %p10262_p10 = scmp.ne.s32.totalorder %s10250_s21, 0 }
  0x78   : > { %s9179_s26 = sand.u32 (!%p10262_p10), 1, %s8899_s28   ;;  %p10263_p0 = scmp.ne.s32.totalorder (!%p10262_p10), %s10247_s1, 0 }
  0x79   : > { %576 = sbr.rel (%p10262_p10) target bundleno = 4268 (0x10ac), region = 92  ;;  %s9182_s13 = sshll.u32 (!%p10262_p10), %s9179_s26, 3 }
  0x7a   : > { %s579_s2 = scalar_lea.sflag (!%p10262_p10), [#allocation4], %s9179_s26  ;;  %s582_s29 = scalar_lea.vmem (!%p10262_p10), [#allocation3], %s9182_s13 }
  0x7e   : > { %8874 = dma.done.wait (%p10263_p0), %s579_s2, 128  }
  0x7f   : > { %8876 = vsyncadd (%p10263_p0), %s579_s2, 4294967168  ;;  %s587_s16 = sand.u32 1, %s9040_s0   ;;  %s591_s20 = scalar_lea.vmem [#allocation6], %s9182_s13 }
  0x80   : > { %s588_s21 = scalar_lea.sflag [#allocation7], %s587_s16 }
  0x81   : > { %8878 = dma.done.wait (%p10263_p0), %s588_s21, 128  }
  0x82   : > { %8880 = vsyncadd (%p10263_p0), %s588_s21, 4294967168  ;;  %p10264_p8 = scmp.eq.s32.totalorder %s9040_s0, 0 }
  0x84   : > { %8882 = dma.done.wait (%p10264_p8), [#allocation7], 512   ;;  %p10265_p11 = pmov %p10264_p8 }
  0x85   : > { %p10266_p2 = pmov %p10264_p8 }
  0x86   : > { %8884 = vsyncadd (%p10265_p11), [#allocation7], 4294966784 }
  0x87   : > { %8886 = dma.done.wait (%p10266_p2), [#allocation10], 512   ;;  %p10267_p6 = pmov %p10266_p2 }
  0x88   : > { %v8915_v0 = vmov 0.0   ;;  %vm8916_vm0 = vmmov 0   ;;  %vm670_vm1 = vcmask 261120   ;;  %s10268_s18 = sld [smem:[#allocation25_spill]]  ;;  %v657_v8 = vld [vmem:[%s582_s29] sm:$0xff]  ;;  %v1658_v56 = vld [vmem:[%s10203_s6 + $0x18] sm:$0xff] }
  0x89   : > { %8888 = vsyncadd (%p10267_p6), [#allocation10], 4294966784  ;;  %7932 = vmatprep.subr.mxu0 %v8915_v0  ;;  %7943 = vmatprep.subr.mxu1 %v8915_v0  ;;  %v672_v10 = vsel %vm670_vm1, %v657_v8, 0  ;;  %s10269_s4 = sld [smem:[#allocation27_spill]]  ;;  %v9418_v57 = vand.u32 4294901760, %v1658_v56  ;;  %v1657_v58 = vld [vmem:[%s10203_s6 + $0x10] sm:$0xff] }
  0x8a   : > { %7940 = vmatprep.mubr.msk.f32.mxu0 %vm8916_vm0, %v8915_v0  ;;  %7951 = vmatprep.mubr.msk.f32.mxu1 %vm8916_vm0, %v8915_v0  ;;  %v9235_v12 = vand.u32 4294901760, %v672_v10  ;;  %v9425_v60 = vand.u32 4294901760, %v1657_v58  ;;  %v1656_v61 = vld [vmem:[%s10203_s6 + $0x8] sm:$0xff]  ;;  %s10270_s3 = sld [smem:[#allocation26_spill]]  ;;  %vm2151_vm2 = vcmask 64512   ;;  %s8917_s23 = smov 120  }
  0x8b   : > { %v1771_v59 = vsub.f32 %v1658_v56, %v9418_v57  ;;  %s8919_s19 = smov 104   ;;  %s8920_s12 = smov 8   ;;  %vm3992_vm4 = vcmask 130112   ;;  %vm4917_vm5 = vcmask 195712   ;;  %vm5842_vm6 = vcmask 261312  }
  0x8c   : > { %v9247_v17 = vsub.f32 %v672_v10, %v9235_v12  ;;  %v1778_v62 = vsub.f32 %v1657_v58, %v9425_v60  ;;  %s8921_s27 = smov 16   ;;  %s8922_s25 = smov 24   ;;  %vm6898_vm9 = vcmask 523264  }
  0x8d   : > { %v1772_v63 = vand.u32 4294901760, %v1771_v59  ;;  %s10271_s15 = sld [smem:[#allocation31_spill]]  ;;  %s656_s24 = scalar_lea.vmem [#allocation11], %s9182_s13 }
  0x8e   : > { %v662_v1 = vld [vmem:[%s10268_s18 + $0x18] sm:$0xff]  ;;  %v661_v2 = vld [vmem:[%s10268_s18 + $0x10] sm:$0xff]  ;;  %v660_v3 = vld [vmem:[%s10268_s18 + $0x8] sm:$0xff]  ;;  %v9254_v22 = vand.u32 4294901760, %v9247_v17  ;;  %s10274_s22 = sld [smem:[#allocation21_spill]] }
  0x8f   : > { %v9219_v4 = vand.u32 4294901760, %v662_v1  ;;  %v9221_v5 = vand.u32 4294901760, %v661_v2  ;;  %v9223_v6 = vand.u32 4294901760, %v660_v3  ;;  %v659_v7 = vld [vmem:[%s10268_s18] sm:$0xff]  ;;  %v1162_v32 = vld [vmem:[%s10269_s4 + $0x18] sm:$0xff]  ;;  %v1161_v34 = vld [vmem:[%s10269_s4 + $0x10] sm:$0xff] }
  0x90   : > { %v9230_v9 = vand.u32 4294901760, %v659_v7  ;;  %v746_v26 = vsub.f32 %v9247_v17, %v9254_v22  ;;  %v9282_v33 = vand.u32 4294901760, %v1162_v32  ;;  %v1160_v35 = vld [vmem:[%s10269_s4 + $0x8] sm:$0xff]  ;;  %v9296_v36 = vand.u32 4294901760, %v1161_v34  ;;  %v1159_v38 = vld [vmem:[%s10269_s4] sm:$0xff]  ;;  %s10275_s16 = sld [smem:[#allocation33_spill]] }
  0x91   : > { %7933 = vmatpush3.msra.mxu0 %v9219_v4  ;;  %v779_v11 = vsub.f32 %v662_v1, %v9219_v4  ;;  %v786_v13 = vsub.f32 %v661_v2, %v9221_v5  ;;  %v9239_v14 = vsub.f32 %v660_v3, %v9223_v6  ;;  %v9307_v39 = vand.u32 4294901760, %v1160_v35  ;;  %v1655_v2 = vld [vmem:[%s10203_s6] sm:$0xff]  ;;  %s10276_s14 = sld [smem:[#allocation34_spill]]  ;;  %s7478_s4 = scalar_lea.sflag [#allocation5], %s9179_s26 }
  0x92   : > { %7934 = vmatprep.subr.mxu0 %v8915_v0  ;;  %v9243_v15 = vsub.f32 %v659_v7, %v9230_v9  ;;  %v9265_v29 = vand.u32 4294901760, %v746_v26  ;;  %v9301_v37 = vsub.f32 %v1162_v32, %v9282_v33  ;;  %v9315_v40 = vsub.f32 %v1161_v34, %v9296_v36 }
  0x93   : > { %7935 = vmatpush3.msra.mxu0 %v9221_v5  ;;  %v780_v16 = vand.u32 4294901760, %v779_v11  ;;  %v787_v18 = vand.u32 4294901760, %v786_v13  ;;  %v794_v19 = vand.u32 4294901760, %v9239_v14  ;;  %v9317_v41 = vand.u32 4294901760, %v1159_v38 }
  0x94   : > { %7936 = vmatprep.subr.mxu0 %v8915_v0  ;;  %v801_v20 = vand.u32 4294901760, %v9243_v15  ;;  %v1276_v42 = vand.u32 4294901760, %v9301_v37  ;;  %v9324_v43 = vsub.f32 %v1160_v35, %v9307_v39  ;;  %v1283_v45 = vand.u32 4294901760, %v9315_v40  ;;  %p10279_p7 = scmp.ne.s32.totalorder %s10274_s22, 0 }
  0x95   : > { %7937 = vmatpush3.msra.mxu0 %v9223_v6  ;;  %v781_v21 = vsub.f32 %v779_v11, %v780_v16  ;;  %v788_v23 = vsub.f32 %v786_v13, %v787_v18  ;;  %v795_v24 = vsub.f32 %v9239_v14, %v794_v19  ;;  %v9333_v44 = vsub.f32 %v1159_v38, %v9317_v41  ;;  %v7619_v38 = vld [vmem:[%s10202_s5] ss:$0 sm:$0xff] }
  0x96   : > { %7938 = vmatprep.subr.mxu0 %v8915_v0  ;;  %v802_v28 = vsub.f32 %v9243_v15, %v801_v20  ;;  %v1277_v46 = vsub.f32 %v9301_v37, %v1276_v42  ;;  %v1290_v47 = vand.u32 4294901760, %v9324_v43  ;;  %v1284_v48 = vsub.f32 %v9315_v40, %v1283_v45 }
  0x97   : > { %7939 = vmatpush3.msra.mxu0 %v9230_v9  ;;  %v782_v25 = vand.u32 4294901760, %v781_v21  ;;  %v789_v27 = vand.u32 4294901760, %v788_v23  ;;  %v796_v30 = vand.u32 4294901760, %v795_v24  ;;  %v1297_v49 = vand.u32 4294901760, %v9333_v44 }
  0x98   : > { %7954 = vmatprep.subr.mxu0 %v8915_v0  ;;  %7941 = vmatmul.mubr.f32.vlgmr.msra.gmra.mxu0 %v9265_v29  ;;  %v803_v31 = vand.u32 4294901760, %v802_v28  ;;  %v1278_v50 = vand.u32 4294901760, %v1277_v46  ;;  %v1291_v51 = vsub.f32 %v9324_v43, %v1290_v47  ;;  %v1285_v52 = vand.u32 4294901760, %v1284_v48 }
  0x99   : > { %7944 = vmatpush3.msra.mxu1 %v782_v25  ;;  %7955 = vmatpush3.msra.mxu0 %v779_v11  ;;  %v1298_v53 = vsub.f32 %v9333_v44, %v1297_v49  ;;  %v9433_v1 = vand.u32 4294901760, %v1656_v61  ;;  %v1773_v3 = vsub.f32 %v1771_v59, %v1772_v63 }
  0x9a   : > { %7945 = vmatprep.subr.mxu1 %v8915_v0  ;;  %7956 = vmatprep.subr.mxu0 %v8915_v0  ;;  %v1292_v54 = vand.u32 4294901760, %v1291_v51 }
  0x9b   : > { %7946 = vmatpush3.msra.mxu1 %v789_v27  ;;  %7957 = vmatpush3.msra.mxu0 %v786_v13  ;;  %v1299_v55 = vand.u32 4294901760, %v1298_v53  ;;  %v1774_v7 = vand.u32 4294901760, %v1773_v3 }
  0x9c   : > { %7947 = vmatprep.subr.mxu1 %v8915_v0  ;;  %7958 = vmatprep.subr.mxu0 %v8915_v0 }
  0x9d   : > { %7948 = vmatpush3.msra.mxu1 %v796_v30  ;;  %7959 = vmatpush3.msra.mxu0 %v9239_v14 }
  0x9e   : > { %7949 = vmatprep.subr.mxu1 %v8915_v0  ;;  %7960 = vmatprep.subr.mxu0 %v8915_v0 }
  0x9f   : > { %7950 = vmatpush3.msra.mxu1 %v803_v31  ;;  %7961 = vmatpush3.msra.mxu0 %v9243_v15 }
  0xa0   : > { %7952 = vmatmul.mubr.f32.vlgmr.msra.gmra.mxu1 %v9235_v12  ;;  %7965 = vmatprep.subr.mxu1 %v8915_v0 }
  0xa1   : > { %7966 = vmatpush3.msra.mxu1 %v9219_v4  ;;  %7962 = vmatprep.mubr.msk.f32.mxu0 %vm8916_vm0, %v8915_v0 }
  0xa2   : > { %7967 = vmatprep.subr.mxu1 %v8915_v0  ;;  %7976 = vmatprep.subr.mxu0 %v8915_v0 }
  0xa3   : > { %7963 = vmatmul.mubr.f32.vlgmr.msra.gmra.mxu0 %v9247_v17  ;;  %7968 = vmatpush3.msra.mxu1 %v9221_v5 }
  0xa4   : > { %7977 = vmatpush3.msra.mxu0 %v780_v16  ;;  %7969 = vmatprep.subr.mxu1 %v8915_v0 }
  0xa5   : > { %7978 = vmatprep.subr.mxu0 %v8915_v0  ;;  %7970 = vmatpush3.msra.mxu1 %v9223_v6 }
  0xa6   : > { %7979 = vmatpush3.msra.mxu0 %v787_v18  ;;  %7971 = vmatprep.subr.mxu1 %v8915_v0 }
  0xa7   : > { %7980 = vmatprep.subr.mxu0 %v8915_v0  ;;  %7972 = vmatpush3.msra.mxu1 %v9230_v9 }
  0xa8   : > { %7973 = vmatprep.mubr.msk.f32.mxu1 %vm8916_vm0, %v8915_v0  ;;  %7981 = vmatpush3.msra.mxu0 %v794_v19 }
  0xa9   : > { %7974 = vmatmul.mubr.f32.vlgmr.msra.gmra.mxu1 %v9254_v22  ;;  %7982 = vmatprep.subr.mxu0 %v8915_v0 }
  0xaa   : > { %7987 = vmatprep.subr.mxu1 %v8915_v0  ;;  %7983 = vmatpush3.msra.mxu0 %v801_v20 }
  0xab   : > { %7984 = vmatprep.mubr.msk.f32.mxu0 %vm8916_vm0, %v8915_v0  ;;  %7988 = vmatpush3.msra.mxu1 %v9219_v4  ;;  %v1785_v4 = vsub.f32 %v1656_v61, %v9433_v1 }
  0xac   : > { %7985 = vmatmul.mubr.f32.vlgmr.msra.gmra.mxu0 %v9235_v12  ;;  %7989 = vmatprep.subr.mxu1 %v8915_v0 }
  0xad   : > { %7998 = vmatprep.subr.mxu0 %v8915_v0  ;;  %7990 = vmatpush3.msra.mxu1 %v9221_v5  ;;  %v1779_v5 = vand.u32 4294901760, %v1778_v62  ;;  %v1786_v10 = vand.u32 4294901760, %v1785_v4 }
  0xae   : > { %7999 = vmatpush3.msra.mxu0 %v9282_v33  ;;  %7991 = vmatprep.subr.mxu1 %v8915_v0 }
  0xaf   : > { %8000 = vmatprep.subr.mxu0 %v8915_v0  ;;  %7992 = vmatpush3.msra.mxu1 %v9223_v6  ;;  %v1700_v6 = vand.u32 4294901760, %v1655_v2  ;;  %v1780_v8 = vsub.f32 %v1778_v62, %v1779_v5  ;;  %v1787_v13 = vsub.f32 %v1785_v4, %v1786_v10 }
  0xb0   : > { %8001 = vmatpush3.msra.mxu0 %v9296_v36  ;;  %7993 = vmatprep.subr.mxu1 %v8915_v0 }
  0xb1   : > { %8002 = vmatprep.subr.mxu0 %v8915_v0  ;;  %7994 = vmatpush3.msra.mxu1 %v9230_v9  ;;  %v1792_v9 = vsub.f32 %v1655_v2, %v1700_v6  ;;  %v1781_v11 = vand.u32 4294901760, %v1780_v8  ;;  %v1788_v15 = vand.u32 4294901760, %v1787_v13 }
  0xb2   : > { %7995 = vmatprep.mubr.msk.f32.mxu1 %vm8916_vm0, %v8915_v0  ;;  %8003 = vmatpush3.msra.mxu0 %v9307_v39 }
  0xb3   : > { %7996 = vmatmul.mubr.f32.vlgmr.msra.gmra.mxu1 %v9235_v12  ;;  %8004 = vmatprep.subr.mxu0 %v8915_v0  ;;  %v1793_v14 = vand.u32 4294901760, %v1792_v9 }
  0xb4   : > { %8009 = vmatprep.subr.mxu1 %v8915_v0  ;;  %8005 = vmatpush3.msra.mxu0 %v9317_v41 }
  0xb5   : > { %8010 = vmatpush3.msra.mxu1 %v1278_v50  ;;  %8006 = vmatprep.mubr.msk.f32.mxu0 %vm8916_vm0, %v8915_v0  ;;  %v1794_v16 = vsub.f32 %v1792_v9, %v1793_v14 }
  0xb6   : > { %8011 = vmatprep.subr.mxu1 %v8915_v0  ;;  %8020 = vmatprep.subr.mxu0 %v8915_v0 }
  0xb7   : > { %8007 = vmatmul.mubr.f32.vlgmr.msra.gmra.mxu0 %v9265_v29  ;;  %8012 = vmatpush3.msra.mxu1 %v1285_v52  ;;  %v1795_v18 = vand.u32 4294901760, %v1794_v16 }
  0xb8   : > { %8021 = vmatpush3.msra.mxu0 %v9301_v37  ;;  %8013 = vmatprep.subr.mxu1 %v8915_v0 }
  0xb9   : > { %8022 = vmatprep.subr.mxu0 %v8915_v0  ;;  %8014 = vmatpush3.msra.mxu1 %v1292_v54 }
  0xba   : > { %8023 = vmatpush3.msra.mxu0 %v9315_v40  ;;  %8015 = vmatprep.subr.mxu1 %v8915_v0 }
  0xbb   : > { %8024 = vmatprep.subr.mxu0 %v8915_v0  ;;  %8016 = vmatpush3.msra.mxu1 %v1299_v55 }
  0xbc   : > { %8017 = vmatprep.mubr.msk.f32.mxu1 %vm8916_vm0, %v8915_v0  ;;  %8025 = vmatpush3.msra.mxu0 %v9324_v43 }
  0xbd   : > { %8018 = vmatmul.mubr.f32.vlgmr.msra.gmra.mxu1 %v9235_v12  ;;  %8026 = vmatprep.subr.mxu0 %v8915_v0 }
  0xbe   : > { %8031 = vmatprep.subr.mxu1 %v8915_v0  ;;  %8027 = vmatpush3.msra.mxu0 %v9333_v44 }
  0xbf   : > { %8032 = vmatpush3.msra.mxu1 %v9282_v33  ;;  %8028 = vmatprep.mubr.msk.f32.mxu0 %vm8916_vm0, %v8915_v0 }
  0xc0   : > { %8033 = vmatprep.subr.mxu1 %v8915_v0  ;;  %8042 = vmatprep.subr.mxu0 %v8915_v0 }
  0xc1   : > { %8029 = vmatmul.mubr.f32.vlgmr.msra.gmra.mxu0 %v9247_v17  ;;  %8034 = vmatpush3.msra.mxu1 %v9296_v36 }
  0xc2   : > { %8043 = vmatpush3.msra.mxu0 %v1276_v42  ;;  %8035 = vmatprep.subr.mxu1 %v8915_v0 }
  0xc3   : > { %8044 = vmatprep.subr.mxu0 %v8915_v0  ;;  %8036 = vmatpush3.msra.mxu1 %v9307_v39 }
  0xc4   : > { %8045 = vmatpush3.msra.mxu0 %v1283_v45  ;;  %8037 = vmatprep.subr.mxu1 %v8915_v0 }
  0xc5   : > { %8046 = vmatprep.subr.mxu0 %v8915_v0  ;;  %8038 = vmatpush3.msra.mxu1 %v9317_v41 }
  0xc6   : > { %8039 = vmatprep.mubr.msk.f32.mxu1 %vm8916_vm0, %v8915_v0  ;;  %8047 = vmatpush3.msra.mxu0 %v1290_v47 }
  0xc7   : > { %8040 = vmatmul.mubr.f32.vlgmr.msra.gmra.mxu1 %v9254_v22  ;;  %8048 = vmatprep.subr.mxu0 %v8915_v0 }
  0xc8   : > { %8053 = vmatprep.subr.mxu1 %v8915_v0  ;;  %8049 = vmatpush3.msra.mxu0 %v1297_v49 }
  0xc9   : > { %8050 = vmatprep.mubr.msk.f32.mxu0 %vm8916_vm0, %v8915_v0  ;;  %8054 = vmatpush3.msra.mxu1 %v9282_v33 }
  0xca   : > { %8051 = vmatmul.mubr.f32.vlgmr.msra.gmra.mxu0 %v9235_v12  ;;  %8055 = vmatprep.subr.mxu1 %v8915_v0 }
  0xcb   : > { %8061 = vmatprep.mubr.msk.f32.mxu1 %vm8916_vm0, %v8915_v0  ;;  %8056 = vmatpush3.msra.mxu1 %v9296_v36 }
  0xcc   : > { %8064 = vmatprep.subr.mxu0 %v8915_v0  ;;  %8057 = vmatprep.subr.mxu1 %v8915_v0 }
  0xcd   : > { %8072 = vmatprep.mubr.msk.f32.mxu0 %vm8916_vm0, %v8915_v0  ;;  %8058 = vmatpush3.msra.mxu1 %v9307_v39 }
  0xce   : > { %8059 = vmatprep.subr.mxu1 %v8915_v0  ;;  %8065 = vmatpush3.msra.mxu0 %v9418_v57 }
  0xcf   : > { %8060 = vmatpush3.msra.mxu1 %v9317_v41  ;;  %8066 = vmatprep.subr.mxu0 %v8915_v0 }
  0xd0   : > { %8062 = vmatmul.mubr.f32.vlgmr.msra.gmra.mxu1 %v9235_v12  ;;  %8075 = vmatprep.subr.mxu1 %v8915_v0 }
  0xd1   : > { %8083 = vmatprep.mubr.msk.f32.mxu1 %vm8916_vm0, %v8915_v0  ;;  %8067 = vmatpush3.msra.mxu0 %v9425_v60 }
  0xd2   : > { %8068 = vmatprep.subr.mxu0 %v8915_v0  ;;  %8076 = vmatpush3.msra.mxu1 %v1774_v7 }
  0xd3   : > { %8069 = vmatpush3.msra.mxu0 %v9433_v1  ;;  %8077 = vmatprep.subr.mxu1 %v8915_v0 }
  0xd4   : > { %8070 = vmatprep.subr.mxu0 %v8915_v0  ;;  %8078 = vmatpush3.msra.mxu1 %v1781_v11 }
  0xd5   : > { %8071 = vmatpush3.msra.mxu0 %v1700_v6  ;;  %8079 = vmatprep.subr.mxu1 %v8915_v0 }
  0xd6   : > { %8086 = vmatprep.subr.mxu0 %v8915_v0  ;;  %8073 = vmatmul.mubr.f32.vlgmr.msra.gmra.mxu0 %v9265_v29 }
  0xd7   : > { %8087 = vmatpush3.msra.mxu0 %v1771_v59  ;;  %8080 = vmatpush3.msra.mxu1 %v1788_v15 }
  0xd8   : > { %8088 = vmatprep.subr.mxu0 %v8915_v0  ;;  %8081 = vmatprep.subr.mxu1 %v8915_v0 }
  0xd9   : > { %8089 = vmatpush3.msra.mxu0 %v1778_v62  ;;  %8082 = vmatpush3.msra.mxu1 %v1795_v18 }
  0xda   : > { %8090 = vmatprep.subr.mxu0 %v8915_v0  ;;  %8097 = vmatprep.subr.mxu1 %v8915_v0 }
  0xdb   : > { %8091 = vmatpush3.msra.mxu0 %v1785_v4  ;;  %8084 = vmatmul.mubr.f32.vlgmr.msra.gmra.mxu1 %v9235_v12 }
  0xdc   : > { %8092 = vmatprep.subr.mxu0 %v8915_v0  ;;  %8098 = vmatpush3.msra.mxu1 %v9418_v57 }
  0xdd   : > { %8093 = vmatpush3.msra.mxu0 %v1792_v9  ;;  %8094 = vmatprep.mubr.msk.f32.mxu0 %vm8916_vm0, %v8915_v0 }
  0xde   : > { %8099 = vmatprep.subr.mxu1 %v8915_v0  ;;  %8108 = vmatprep.subr.mxu0 %v8915_v0 }
  0xdf   : > { %8100 = vmatpush3.msra.mxu1 %v9425_v60  ;;  %8095 = vmatmul.mubr.f32.vlgmr.msra.gmra.mxu0 %v9247_v17 }
  0xe0   : > { %8101 = vmatprep.subr.mxu1 %v8915_v0  ;;  %8109 = vmatpush3.msra.mxu0 %v1772_v63 }
  0xe1   : > { %8102 = vmatpush3.msra.mxu1 %v9433_v1  ;;  %8105 = vmatprep.mubr.msk.f32.mxu1 %vm8916_vm0, %v8915_v0 }
  0xe2   : > { %8103 = vmatprep.subr.mxu1 %v8915_v0  ;;  %8110 = vmatprep.subr.mxu0 %v8915_v0 }
  0xe3   : > { %8104 = vmatpush3.msra.mxu1 %v1700_v6  ;;  %8111 = vmatpush3.msra.mxu0 %v1779_v5 }
  0xe4   : > { %8119 = vmatprep.subr.mxu1 %v8915_v0  ;;  %8106 = vmatmul.mubr.f32.vlgmr.msra.gmra.mxu1 %v9254_v22 }
  0xe5   : > { %8120 = vmatpush3.msra.mxu1 %v9418_v57  ;;  %8112 = vmatprep.subr.mxu0 %v8915_v0 }
  0xe6   : > { %8121 = vmatprep.subr.mxu1 %v8915_v0  ;;  %8113 = vmatpush3.msra.mxu0 %v1786_v10 }
  0xe7   : > { %8122 = vmatpush3.msra.mxu1 %v9425_v60  ;;  %8114 = vmatprep.subr.mxu0 %v8915_v0 }
  0xe8   : > { %8123 = vmatprep.subr.mxu1 %v8915_v0  ;;  %8115 = vmatpush3.msra.mxu0 %v1793_v14 }
  0xe9   : > { %8116 = vmatprep.mubr.msk.f32.mxu0 %vm8916_vm0, %v8915_v0  ;;  %8124 = vmatpush3.msra.mxu1 %v9433_v1 }
  0xea   : > { %8117 = vmatmul.mubr.f32.vlgmr.msra.gmra.mxu0 %v9235_v12  ;;  %8125 = vmatprep.subr.mxu1 %v8915_v0 }
  0xeb   : > { %8126 = vmatpush3.msra.mxu1 %v1700_v6  ;;  %8127 = vmatprep.mubr.msk.f32.mxu1 %vm8916_vm0, %v8915_v0  ;;  %v7620_v6 = vld [vmem:[%s10204_s7] ss:$0 sm:$0xff] }
  0xec   : > { %8128 = vmatmul.mubr.f32.vlgmr.msra.gmra.mxu1 %v9235_v12  ;;  %8130 = vmatprep.subr.mxu0 %v8915_v0  ;;  %v7618_v12 = vld [vmem:[%s10270_s3] ss:$0 sm:$0xff] }
  0xed   : > { %8132 = vmatprep.mubr.msk.f32.mxu0 %vm8916_vm0, %v8915_v0  ;;  %8135 = vmatprep.subr.mxu1 %v8915_v0 }
  0xee   : > { %8137 = vmatprep.mubr.msk.f32.mxu1 %vm8916_vm0, %v8915_v0 }
 0x158   : > { %v749_v17 = vpop.f32.mrf.mxu0 }
 0x159   : > { %v750_v28 = vadd.f32 %v7618_v12, %v749_v17 }
 0x15a   : > { %v7942_v19 = vpop.f32.mrf.mxu0 }
 0x160   : > { %v840_v20 = vpop.f32.mrf.mxu1 }
 0x161   : > { %v841_v30 = vadd.f32 %v840_v20, %v750_v28 }
 0x162   : > { %v7953_v21 = vpop.f32.mrf.mxu1 }
 0x163   : > { %v920_v22 = vpop.f32.mrf.mxu0 }
 0x164   : > { %v921_v33 = vadd.f32 %v920_v22, %v841_v30 }
 0x165   : > { %v7964_v23 = vpop.f32.mrf.mxu0 }
 0x169   : > { %v997_v24 = vpop.f32.mrf.mxu1 }
 0x16a   : > { %v998_v35 = vadd.f32 %v997_v24, %v921_v33 }
 0x16b   : > { %v7975_v25 = vpop.f32.mrf.mxu1 }
 0x16c   : > { %v1080_v26 = vpop.f32.mrf.mxu0 }
 0x16d   : > { %v1081_v37 = vadd.f32 %v1080_v26, %v998_v35 }
 0x16e   : > { %v7986_v27 = vpop.f32.mrf.mxu0 }
 0x173   : > { %v1155_v29 = vpop.f32.mrf.mxu1 }
 0x174   : > { %v9493_v40 = vadd.f32 %v1155_v29, %v1081_v37 }
 0x175   : > { %v7997_v31 = vpop.f32.mrf.mxu1 }
 0x176   : > { %v2153_v44 = vsel %vm2151_vm2, %v9493_v40, 0 }
 0x177   : > { %v1245_v32 = vpop.f32.mrf.mxu0  ;;  %v2224_v47 = vand.u32 4294901760, %v2153_v44 }
 0x178   : > { %v1246_v42 = vadd.f32 %v7619_v38, %v1245_v32 }
 0x179   : > { %v8008_v34 = vpop.f32.mrf.mxu0  ;;  %v2225_v51 = vsub.f32 %v2153_v44, %v2224_v47 }
 0x17b   : > { %v2226_v55 = vand.u32 4294901760, %v2225_v51 }
 0x17d   : > { %v1336_v36 = vpop.f32.mrf.mxu1  ;;  %v2227_v60 = vsub.f32 %v2225_v51, %v2226_v55 }
 0x17e   : > { %v1337_v45 = vadd.f32 %v1336_v36, %v1246_v42 }
 0x17f   : > { %v8019_v39 = vpop.f32.mrf.mxu1  ;;  %v2228_v63 = vand.u32 4294901760, %v2227_v60 }
 0x181   : > { %v1416_v41 = vpop.f32.mrf.mxu0 }
 0x182   : > { %v1417_v49 = vadd.f32 %v1416_v41, %v1337_v45 }
 0x183   : > { %v8030_v43 = vpop.f32.mrf.mxu0 }
 0x184   : > { %v9540_v43 = vld [vmem:[%s591_s20] sm:$0xff]  ;;  %s8918_s20 = smov 112  }
 0x185   : > { %vm2605_vm3 = vcmp.eq.f32.partialorder %v9540_v43, 0.0 }
 0x187   : > { %v1493_v46 = vpop.f32.mrf.mxu1 }
 0x188   : > { %v1494_v52 = vadd.f32 %v1493_v46, %v1417_v49 }
 0x189   : > { %v8041_v48 = vpop.f32.mrf.mxu1 }
 0x18a   : > { %v1576_v50 = vpop.f32.mrf.mxu0 }
 0x18b   : > { %v1577_v54 = vadd.f32 %v1576_v50, %v1494_v52 }
 0x18c   : > { %v8052_v53 = vpop.f32.mrf.mxu0 }
 0x190   : > { %v1651_v56 = vpop.f32.mrf.mxu1 }
 0x191   : > { %v9497_v57 = vadd.f32 %v1651_v56, %v1577_v54 }
 0x192   : > { %v8063_v58 = vpop.f32.mrf.mxu1 }
 0x193   : > { %3070 = vrot.lane.b32.xlu1 %v9497_v57, %s8917_s23  ;;  %v2156_v59 = vsel %vm2151_vm2, %v9497_v57, 0 }
 0x194   : > { %v2189_v61 = vand.u32 4294901760, %v2156_v59 }
 0x196   : > { %8131 = vmatpush3.xpose.msra.mxu0 %v2189_v61  ;;  %v2266_v62 = vsub.f32 %v2156_v59, %v2189_v61  ;;  %v1741_v4 = vpop.f32.mrf.mxu0 }
 0x197   : > { %3068 = vrot.lane.b32.xlu1 %v9493_v40, %s8917_s23  ;;  %8140 = vmatprep.subr.mxu0 %v8915_v0  ;;  %v1742_v7 = vadd.f32 %v7620_v6, %v1741_v4 }
 0x198   : > { %v2267_v1 = vand.u32 4294901760, %v2266_v62  ;;  %v8074_v5 = vpop.f32.mrf.mxu0 }
 0x199   : > { %8133 = vmatmul.mubr.f32.vlgmr.msra.gmra.mxu0 %v2228_v63 }
 0x19a   : > { %8141 = vmatpush3.xpose.msra.mxu0 %v2266_v62  ;;  %8142 = vmatprep.mubr.msk.f32.mxu0 %vm8916_vm0, %v8915_v0  ;;  %v2268_v2 = vsub.f32 %v2266_v62, %v2267_v1 }
 0x19b   : > { %8150 = vmatprep.subr.mxu0 %v8915_v0  ;;  %v1832_v8 = vpop.f32.mrf.mxu1 }
 0x19c   : > { %v2269_v3 = vand.u32 4294901760, %v2268_v2  ;;  %v1833_v10 = vadd.f32 %v1832_v8, %v1742_v7 }
 0x19d   : > { %8143 = vmatmul.mubr.f32.vlgmr.msra.gmra.mxu0 %v2225_v51  ;;  %v8085_v9 = vpop.f32.mrf.mxu1 }
 0x19e   : > { %8136 = vmatpush3.xpose.msra.mxu1 %v2269_v3  ;;  %8151 = vmatpush3.xpose.msra.mxu0 %v2267_v1 }
 0x19f   : > { %8152 = vmatprep.mubr.msk.f32.mxu0 %vm8916_vm0, %v8915_v0  ;;  %8145 = vmatprep.subr.mxu1 %v8915_v0  ;;  %v1912_v11 = vpop.f32.mrf.mxu0 }
 0x1a0   : > { %8160 = vmatprep.subr.mxu0 %v8915_v0  ;;  %v1913_v14 = vadd.f32 %v1912_v11, %v1833_v10 }
 0x1a1   : > { %8138 = vmatmul.mubr.f32.vlgmr.msra.gmra.mxu1 %v2224_v47  ;;  %8153 = vmatmul.mubr.f32.vlgmr.msra.gmra.mxu0 %v2224_v47  ;;  %v8096_v13 = vpop.f32.mrf.mxu0 }
 0x1a2   : > { %8146 = vmatpush3.xpose.msra.mxu1 %v2189_v61  ;;  %8147 = vmatprep.mubr.msk.f32.mxu1 %vm8916_vm0, %v8915_v0 }
 0x1a3   : > { %8155 = vmatprep.subr.mxu1 %v8915_v0  ;;  %8162 = vmatprep.mubr.msk.f32.mxu0 %vm8916_vm0, %v8915_v0 }
 0x1a4   : > { %v1989_v15 = vpop.f32.mrf.mxu1 }
 0x1a5   : > { %8148 = vmatmul.mubr.f32.vlgmr.msra.gmra.mxu1 %v2226_v55  ;;  %v1990_v18 = vadd.f32 %v1989_v15, %v1913_v14 }
 0x1a6   : > { %8156 = vmatpush3.xpose.msra.mxu1 %v2189_v61  ;;  %8157 = vmatprep.mubr.msk.f32.mxu1 %vm8916_vm0, %v8915_v0  ;;  %v8107_v16 = vpop.f32.mrf.mxu1 }
 0x1a7   : > { %8165 = vmatprep.subr.mxu1 %v8915_v0 }
 0x1a9   : > { %8158 = vmatmul.mubr.f32.vlgmr.msra.gmra.mxu1 %v2224_v47 }
 0x1aa   : > { %8167 = vmatprep.mubr.msk.f32.mxu1 %vm8916_vm0, %v8915_v0  ;;  %v2072_v17 = vpop.f32.mrf.mxu0 }
 0x1ab   : > { %v2073_v19 = vadd.f32 %v2072_v17, %v1990_v18 }
 0x1ac   : > { %v2147_v20 = vpop.f32.mrf.mxu1  ;;  %v8118_v21 = vpop.f32.mrf.mxu0 }
 0x1ad   : > { %v9526_v22 = vadd.f32 %v2147_v20, %v2073_v19 }
 0x1ae   : > { %v8129_v23 = vpop.f32.mrf.mxu1 }
 0x1af   : > { %v2652_v24 = vand.u32 4294901760, %v9526_v22 }
 0x1b1   : > { %8161 = vmatpush3.msra.mxu0 %v2652_v24  ;;  %v9530_v25 = vsub.f32 %v9526_v22, %v2652_v24 }
 0x1b2   : > { %8170 = vmatprep.subr.mxu0 %v8915_v0 }
 0x1b3   : > { %v2730_v26 = vand.u32 4294901760, %v9530_v25 }
 0x1b5   : > { %v2731_v12 = vsub.f32 %v9530_v25, %v2730_v26 }
 0x1b7   : > { %v2732_v27 = vand.u32 4294901760, %v2731_v12 }
 0x1b9   : > { %8166 = vmatpush3.msra.mxu1 %v2732_v27 }
 0x1ba   : > { %8175 = vmatprep.subr.mxu1 %v8915_v0 }
 0x205   : > { %v3071_v56 = vpop.permute.xlu1 %3070 }
 0x206   : > { %v3074_v58 = vsel %vm2151_vm2, %v3071_v56, 0 }
 0x207   : > { %v3107_v59 = vand.u32 4294901760, %v3074_v58 }
 0x209   : > { %v3184_v61 = vsub.f32 %v3074_v58, %v3107_v59  ;;  %v3069_v63 = vpop.permute.xlu1 %3068 }
 0x20a   : > { %v3072_v4 = vsel %vm2151_vm2, %v3069_v63, 0 }
 0x20b   : > { %v3185_v3 = vand.u32 4294901760, %v3184_v61  ;;  %v3142_v6 = vand.u32 4294901760, %v3072_v4 }
 0x20d   : > { %v3186_v8 = vsub.f32 %v3184_v61, %v3185_v3  ;;  %v3143_v10 = vsub.f32 %v3072_v4, %v3142_v6 }
 0x20f   : > { %v3187_v13 = vand.u32 4294901760, %v3186_v8  ;;  %v3144_v14 = vand.u32 4294901760, %v3143_v10 }
 0x211   : > { %v3145_v15 = vsub.f32 %v3143_v10, %v3144_v14 }
 0x213   : > { %v3146_v16 = vand.u32 4294901760, %v3145_v15 }
 0x259   : > { %v2230_v28 = vpop.f32.mrf.mxu0 }
 0x25b   : > { %v8134_v29 = vpop.f32.mrf.mxu0 }
 0x25d   : > { %v2380_v30 = vpop.f32.mrf.mxu0 }
 0x25f   : > { %v8144_v31 = vpop.f32.mrf.mxu0 }
 0x261   : > { %v2306_v32 = vpop.f32.mrf.mxu1  ;;  %v2528_v33 = vpop.f32.mrf.mxu0 }
 0x262   : > { %v2307_v34 = vadd.f32 %v2306_v32, %v2230_v28 }
 0x263   : > { %v8139_v35 = vpop.f32.mrf.mxu1  ;;  %v8154_v36 = vpop.f32.mrf.mxu0 }
 0x264   : > { %v2381_v37 = vadd.f32 %v2380_v30, %v2307_v34 }
 0x265   : > { %v2454_v38 = vpop.f32.mrf.mxu1 }
 0x266   : > { %v2455_v39 = vadd.f32 %v2454_v38, %v2381_v37 }
 0x267   : > { %v8149_v41 = vpop.f32.mrf.mxu1 }
 0x268   : > { %v2529_v42 = vadd.f32 %v2528_v33, %v2455_v39 }
 0x269   : > { %v2600_v44 = vpop.f32.mrf.mxu1 }
 0x26a   : > { %v2601_v45 = vadd.f32 %v2600_v44, %v2529_v42 }
 0x26b   : > { %v8159_v46 = vpop.f32.mrf.mxu1 }
 0x26c   : > { %v2604_v47 = vmul.f32 0.35355338, %v2601_v45 }
 0x26e   : > { %v2606_v48 = vsel %vm2605_vm3, -1e+09, %v2604_v47 }
 0x26f   : > { %v2607_v49 = vsel %vm2151_vm2, %v2606_v48, -inf }
 0x270   : > { %2608 = vmax.xlane.f32.xlu0 %v2607_v49 }
 0x2f9   : > { %v2609_v50 = vpop.xlane.xlu0 %2608 }
 0x2fa   : > { %v2610_v51 = vsub.f32 %v2606_v48, %v2609_v50 }
 0x2fc   : > { %v2611_v52 = vmul.f32 1.442695, %v2610_v51 }
 0x2fe   : > { %8698 = vpow2.f32 %v2611_v52 }
 0x30b   : > { %v8699_v53 = vpop.eup %8698 }
 0x30c   : > { %v2613_v54 = vsel %vm2151_vm2, %v8699_v53, 0.0 }
 0x30d   : > { %2614 = vadd.xlane.f32.xlu0 %v2613_v54 }
 0x396   : > { %v2615_v55 = vpop.xlane.xlu0 %2614 }
 0x397   : > { %8700 = vrcp.f32 %v2615_v55 }
 0x3a4   : > { %v8701_v60 = vpop.eup %8700 }
 0x3a5   : > { %v2617_v62 = vmul.f32 %v8701_v60, %v8699_v53 }
 0x3a7   : > { %v2619_v1 = vsel %vm2151_vm2, %v2617_v62, 0 }
 0x3a8   : > { %v2687_v2 = vand.u32 4294901760, %v2619_v1 }
 0x3aa   : > { %v2688_v5 = vsub.f32 %v2619_v1, %v2687_v2  ;;  %8168 = vmatmul.mubr.f32.vlgmr.msra.gmra.mxu1 %v2687_v2 }
 0x3ab   : > { %8176 = vmatpush3.msra.mxu1 %v2652_v24  ;;  %8177 = vmatprep.mubr.msk.f32.mxu1 %vm8916_vm0, %v8915_v0 }
 0x3ac   : > { %8185 = vmatprep.subr.mxu1 %v8915_v0  ;;  %v2689_v7 = vand.u32 4294901760, %v2688_v5 }
 0x3ae   : > { %8178 = vmatmul.mubr.f32.vlgmr.msra.gmra.mxu1 %v2689_v7  ;;  %v2690_v9 = vsub.f32 %v2688_v5, %v2689_v7 }
 0x3af   : > { %8186 = vmatpush3.msra.mxu1 %v2652_v24  ;;  %8187 = vmatprep.mubr.msk.f32.mxu1 %vm8916_vm0, %v8915_v0 }
 0x3b0   : > { %8195 = vmatprep.subr.mxu1 %v8915_v0  ;;  %v2691_v11 = vand.u32 4294901760, %v2690_v9 }
 0x3b2   : > { %8163 = vmatmul.mubr.f32.vlgmr.msra.gmra.mxu0 %v2691_v11  ;;  %8188 = vmatmul.mubr.f32.vlgmr.msra.gmra.mxu1 %v2687_v2 }
 0x3b3   : > { %8171 = vmatpush3.msra.mxu0 %v9530_v25  ;;  %8196 = vmatpush3.xpose.msra.mxu1 %v3187_v13 }
 0x3b4   : > { %8172 = vmatprep.mubr.msk.f32.mxu0 %vm8916_vm0, %v8915_v0  ;;  %8180 = vmatprep.subr.mxu0 %v8915_v0 }
 0x3b5   : > { %8197 = vmatprep.mubr.msk.f32.mxu1 %vm8916_vm0, %v8915_v0  ;;  %8205 = vmatprep.subr.mxu1 %v8915_v0 }
 0x3b6   : > { %8173 = vmatmul.mubr.f32.vlgmr.msra.gmra.mxu0 %v2688_v5  ;;  %8198 = vmatmul.mubr.f32.vlgmr.msra.gmra.mxu1 %v3142_v6 }
 0x3b7   : > { %8181 = vmatpush3.msra.mxu0 %v2730_v26  ;;  %8206 = vmatpush3.xpose.msra.mxu1 %v3107_v59 }
 0x3b8   : > { %8182 = vmatprep.mubr.msk.f32.mxu0 %vm8916_vm0, %v8915_v0  ;;  %8190 = vmatprep.subr.mxu0 %v8915_v0 }
 0x3b9   : > { %8207 = vmatprep.mubr.msk.f32.mxu1 %vm8916_vm0, %v8915_v0  ;;  %8215 = vmatprep.subr.mxu1 %v8915_v0 }
 0x3ba   : > { %8183 = vmatmul.mubr.f32.vlgmr.msra.gmra.mxu0 %v2687_v2  ;;  %8208 = vmatmul.mubr.f32.vlgmr.msra.gmra.mxu1 %v3144_v14 }
 0x3bb   : > { %8191 = vmatpush3.xpose.msra.mxu0 %v3107_v59  ;;  %8216 = vmatpush3.xpose.msra.mxu1 %v3107_v59 }
 0x3bc   : > { %8192 = vmatprep.mubr.msk.f32.mxu0 %vm8916_vm0, %v8915_v0  ;;  %8200 = vmatprep.subr.mxu0 %v8915_v0 }
 0x3bd   : > { %8217 = vmatprep.mubr.msk.f32.mxu1 %vm8916_vm0, %v8915_v0  ;;  %8225 = vmatprep.subr.mxu1 %v8915_v0 }
 0x3be   : > { %8193 = vmatmul.mubr.f32.vlgmr.msra.gmra.mxu0 %v3146_v16  ;;  %8218 = vmatmul.mubr.f32.vlgmr.msra.gmra.mxu1 %v3142_v6 }
 0x3bf   : > { %8201 = vmatpush3.xpose.msra.mxu0 %v3184_v61  ;;  %8202 = vmatprep.mubr.msk.f32.mxu0 %vm8916_vm0, %v8915_v0 }
 0x3c0   : > { %8210 = vmatprep.subr.mxu0 %v8915_v0  ;;  %8227 = vmatprep.mubr.msk.f32.mxu1 %vm8916_vm0, %v8915_v0 }
 0x3c2   : > { %8203 = vmatmul.mubr.f32.vlgmr.msra.gmra.mxu0 %v3143_v10 }
 0x3c3   : > { %8211 = vmatpush3.xpose.msra.mxu0 %v3185_v3  ;;  %8212 = vmatprep.mubr.msk.f32.mxu0 %vm8916_vm0, %v8915_v0 }
 0x3c4   : > { %8220 = vmatprep.subr.mxu0 %v8915_v0 }
 0x3c6   : > { %8213 = vmatmul.mubr.f32.vlgmr.msra.gmra.mxu0 %v3142_v6 }
 0x3c7   : > { %8222 = vmatprep.mubr.msk.f32.mxu0 %vm8916_vm0, %v8915_v0 }
 0x46a   : > { %v2769_v18 = vpop.f32.mrf.mxu1 }
 0x46c   : > { %v8169_v17 = vpop.f32.mrf.mxu1 }
 0x46e   : > { %v2917_v19 = vpop.f32.mrf.mxu1 }
 0x470   : > { %v8179_v20 = vpop.f32.mrf.mxu1 }
 0x472   : > { %v2693_v21 = vpop.f32.mrf.mxu0  ;;  %v3063_v23 = vpop.f32.mrf.mxu1 }
 0x473   : > { %v2770_v26 = vadd.f32 %v2769_v18, %v2693_v21 }
 0x474   : > { %v8164_v24 = vpop.f32.mrf.mxu0  ;;  %v8189_v25 = vpop.f32.mrf.mxu1 }
 0x476   : > { %v2843_v12 = vpop.f32.mrf.mxu0  ;;  %v3224_v27 = vpop.f32.mrf.mxu1 }
 0x477   : > { %v2844_v28 = vadd.f32 %v2843_v12, %v2770_v26 }
 0x478   : > { %v8174_v29 = vpop.f32.mrf.mxu0  ;;  %v8199_v30 = vpop.f32.mrf.mxu1 }
 0x479   : > { %v2918_v31 = vadd.f32 %v2917_v19, %v2844_v28 }
 0x47a   : > { %v2991_v32 = vpop.f32.mrf.mxu0  ;;  %v3372_v33 = vpop.f32.mrf.mxu1 }
 0x47b   : > { %v2992_v34 = vadd.f32 %v2991_v32, %v2918_v31 }
 0x47c   : > { %v8184_v35 = vpop.f32.mrf.mxu0  ;;  %v8209_v36 = vpop.f32.mrf.mxu1 }
 0x47d   : > { %v3064_v37 = vadd.f32 %v3063_v23, %v2992_v34 }
 0x47e   : > { %v3148_v38 = vpop.f32.mrf.mxu0  ;;  %v3518_v39 = vpop.f32.mrf.mxu1 }
 0x47f   : > { %3067 = vst.msk [vmem:[#allocation2] sm:$0xff] %vm2151_vm2, %v3064_v37  ;;  %v3225_v44 = vadd.f32 %v3224_v27, %v3148_v38 }
 0x480   : > { %v8194_v41 = vpop.f32.mrf.mxu0  ;;  %v8219_v42 = vpop.f32.mrf.mxu1 }
 0x482   : > { %v3298_v45 = vpop.f32.mrf.mxu0 }
 0x483   : > { %v3299_v46 = vadd.f32 %v3298_v45, %v3225_v44 }
 0x484   : > { %v8204_v47 = vpop.f32.mrf.mxu0 }
 0x485   : > { %v3373_v48 = vadd.f32 %v3372_v33, %v3299_v46 }
 0x486   : > { %v3446_v49 = vpop.f32.mrf.mxu0 }
 0x487   : > { %v3447_v50 = vadd.f32 %v3446_v49, %v3373_v48 }
 0x488   : > { %v8214_v51 = vpop.f32.mrf.mxu0 }
 0x489   : > { %v3519_v52 = vadd.f32 %v3518_v39, %v3447_v50 }
 0x48b   : > { %v3522_v53 = vmul.f32 0.35355338, %v3519_v52 }
 0x48d   : > { %v3523_v54 = vsel %vm2605_vm3, -1e+09, %v3522_v53 }
 0x48e   : > { %v3524_v55 = vsel %vm2151_vm2, %v3523_v54, -inf }
 0x48f   : > { %3525 = vmax.xlane.f32.xlu0 %v3524_v55 }
 0x4a5   : > { %3536 = vrot.lane.b32.xlu0 %v9526_v22, %s8917_s23  ;;  %s7629_s23 = sshll.u32 %s9040_s0, 7 }
 0x4a9   : > { %3996 = vrot.lane.b32.xlu0 %v9497_v57, %s8918_s20 }
 0x4ad   : > { %3994 = vrot.lane.b32.xlu0 %v9493_v40, %s8918_s20 }
 0x518   : > { %v3526_v56 = vpop.xlane.xlu0 %3525 }
 0x519   : > { %v3527_v58 = vsub.f32 %v3523_v54, %v3526_v56 }
 0x51b   : > { %v3528_v59 = vmul.f32 1.442695, %v3527_v58 }
 0x51c   : > { %v3537_v60 = vpop.permute.xlu0 %3536 }
 0x51d   : > { %8702 = vpow2.f32 %v3528_v59  ;;  %v3573_v61 = vand.u32 4294901760, %v3537_v60 }
 0x51f   : > { %v3650_v62 = vsub.f32 %v3537_v60, %v3573_v61  ;;  %8221 = vmatpush3.msra.mxu0 %v3573_v61 }
 0x520   : > { %8230 = vmatprep.subr.mxu0 %v8915_v0  ;;  %v3997_v6 = vpop.permute.xlu0 %3996 }
 0x521   : > { %v3651_v63 = vand.u32 4294901760, %v3650_v62  ;;  %v4000_v7 = vsel %vm2151_vm2, %v3997_v6, 0 }
 0x522   : > { %v4033_v8 = vand.u32 4294901760, %v4000_v7 }
 0x523   : > { %v3652_v1 = vsub.f32 %v3650_v62, %v3651_v63 }
 0x524   : > { %v9600_v10 = vsub.f32 %v4000_v7, %v4033_v8  ;;  %v3995_v13 = vpop.permute.xlu0 %3994 }
 0x525   : > { %v3653_v2 = vand.u32 4294901760, %v3652_v1  ;;  %v3998_v18 = vsel %vm2151_vm2, %v3995_v13, 0 }
 0x526   : > { %v4111_v16 = vand.u32 4294901760, %v9600_v10  ;;  %v4068_v20 = vand.u32 4294901760, %v3998_v18 }
 0x527   : > { %8226 = vmatpush3.msra.mxu1 %v3653_v2 }
 0x528   : > { %8235 = vmatprep.subr.mxu1 %v8915_v0  ;;  %v4112_v23 = vsub.f32 %v9600_v10, %v4111_v16  ;;  %v4069_v26 = vsub.f32 %v3998_v18, %v4068_v20 }
 0x52a   : > { %v8703_v3 = vpop.eup %8702  ;;  %v4113_v27 = vand.u32 4294901760, %v4112_v23  ;;  %v4070_v29 = vand.u32 4294901760, %v4069_v26 }
 0x52b   : > { %v3530_v4 = vsel %vm2151_vm2, %v8703_v3, 0.0 }
 0x52c   : > { %3531 = vadd.xlane.f32.xlu1 %v3530_v4  ;;  %v4071_v31 = vsub.f32 %v4069_v26, %v4070_v29 }
 0x52e   : > { %v4072_v33 = vand.u32 4294901760, %v4071_v31 }
 0x53d   : > { %4461 = vrot.lane.b32.xlu1 %v9526_v22, %s8918_s20  ;;  %s7491_s20 = sshll.u32 %s656_s24, 4  ;;  %s7492_s20 = int_to_ptr.vmem [resolvable:$true] %s7491_s20 }
 0x53e   : > { %s8831_s2 = scalar_lea.vmem %s7492_s20, 128 }
 0x53f   : > { %p8832_p12 = scmp.ne.s32.totalorder %s7492_s20, %s8831_s2 }
 0x541   : > { %p8833_p9 = pnand %p8832_p12, %p10279_p7 }
 0x543   : > { %p8834_p13 = pneg %p8833_p9 }
 0x5b5   : > { %v3532_v5 = vpop.xlane.xlu1 %3531 }
 0x5b6   : > { %8704 = vrcp.f32 %v3532_v5 }
 0x5b9   : > { %v4462_v17 = vpop.permute.xlu1 %4461 }
 0x5ba   : > { %v9609_v24 = vand.u32 4294901760, %v4462_v17 }
 0x5bc   : > { %v9615_v28 = vsub.f32 %v4462_v17, %v9609_v24 }
 0x5be   : > { %v4576_v30 = vand.u32 4294901760, %v9615_v28 }
 0x5c0   : > { %v4577_v32 = vsub.f32 %v9615_v28, %v4576_v30 }
 0x5c2   : > { %v4578_v34 = vand.u32 4294901760, %v4577_v32 }
 0x5c3   : > { %v8705_v9 = vpop.eup %8704 }
 0x5c4   : > { %v3534_v11 = vmul.f32 %v8705_v9, %v8703_v3 }
 0x5c6   : > { %v3540_v14 = vsel %vm2151_vm2, %v3534_v11, 0 }
 0x5c7   : > { %v3608_v15 = vand.u32 4294901760, %v3540_v14 }
 0x5c9   : > { %v3609_v19 = vsub.f32 %v3540_v14, %v3608_v15  ;;  %8228 = vmatmul.mubr.f32.vlgmr.msra.gmra.mxu1 %v3608_v15 }
 0x5ca   : > { %8236 = vmatpush3.msra.mxu1 %v3573_v61  ;;  %8237 = vmatprep.mubr.msk.f32.mxu1 %vm8916_vm0, %v8915_v0 }
 0x5cb   : > { %8245 = vmatprep.subr.mxu1 %v8915_v0  ;;  %v3610_v21 = vand.u32 4294901760, %v3609_v19 }
 0x5cd   : > { %8238 = vmatmul.mubr.f32.vlgmr.msra.gmra.mxu1 %v3610_v21  ;;  %v3611_v25 = vsub.f32 %v3609_v19, %v3610_v21 }
 0x5ce   : > { %8246 = vmatpush3.msra.mxu1 %v3573_v61  ;;  %8247 = vmatprep.mubr.msk.f32.mxu1 %vm8916_vm0, %v8915_v0 }
 0x5cf   : > { %8255 = vmatprep.subr.mxu1 %v8915_v0  ;;  %v3612_v12 = vand.u32 4294901760, %v3611_v25 }
 0x5d1   : > { %8223 = vmatmul.mubr.f32.vlgmr.msra.gmra.mxu0 %v3612_v12  ;;  %8248 = vmatmul.mubr.f32.vlgmr.msra.gmra.mxu1 %v3608_v15 }
 0x5d2   : > { %8231 = vmatpush3.msra.mxu0 %v3650_v62  ;;  %8256 = vmatpush3.xpose.msra.mxu1 %v4113_v27 }
 0x5d3   : > { %8232 = vmatprep.mubr.msk.f32.mxu0 %vm8916_vm0, %v8915_v0  ;;  %8240 = vmatprep.subr.mxu0 %v8915_v0 }
 0x5d4   : > { %8257 = vmatprep.mubr.msk.f32.mxu1 %vm8916_vm0, %v8915_v0  ;;  %8265 = vmatprep.subr.mxu1 %v8915_v0 }
 0x5d5   : > { %8233 = vmatmul.mubr.f32.vlgmr.msra.gmra.mxu0 %v3609_v19  ;;  %8258 = vmatmul.mubr.f32.vlgmr.msra.gmra.mxu1 %v4068_v20 }
 0x5d6   : > { %8241 = vmatpush3.msra.mxu0 %v3651_v63  ;;  %8266 = vmatpush3.xpose.msra.mxu1 %v4033_v8 }
 0x5d7   : > { %8242 = vmatprep.mubr.msk.f32.mxu0 %vm8916_vm0, %v8915_v0  ;;  %8250 = vmatprep.subr.mxu0 %v8915_v0 }
 0x5d8   : > { %8267 = vmatprep.mubr.msk.f32.mxu1 %vm8916_vm0, %v8915_v0  ;;  %8275 = vmatprep.subr.mxu1 %v8915_v0 }
 0x5d9   : > { %8243 = vmatmul.mubr.f32.vlgmr.msra.gmra.mxu0 %v3608_v15  ;;  %8268 = vmatmul.mubr.f32.vlgmr.msra.gmra.mxu1 %v4070_v29 }
 0x5da   : > { %8251 = vmatpush3.xpose.msra.mxu0 %v4033_v8  ;;  %8276 = vmatpush3.xpose.msra.mxu1 %v4033_v8 }
 0x5db   : > { %8252 = vmatprep.mubr.msk.f32.mxu0 %vm8916_vm0, %v8915_v0  ;;  %8260 = vmatprep.subr.mxu0 %v8915_v0 }
 0x5dc   : > { %8277 = vmatprep.mubr.msk.f32.mxu1 %vm8916_vm0, %v8915_v0  ;;  %8285 = vmatprep.subr.mxu1 %v8915_v0 }
 0x5dd   : > { %8253 = vmatmul.mubr.f32.vlgmr.msra.gmra.mxu0 %v4072_v33  ;;  %8278 = vmatmul.mubr.f32.vlgmr.msra.gmra.mxu1 %v4068_v20 }
 0x5de   : > { %8261 = vmatpush3.xpose.msra.mxu0 %v9600_v10  ;;  %8286 = vmatpush3.msra.mxu1 %v4578_v34 }
 0x5df   : > { %8262 = vmatprep.mubr.msk.f32.mxu0 %vm8916_vm0, %v8915_v0  ;;  %8270 = vmatprep.subr.mxu0 %v8915_v0 }
 0x5e0   : > { %8287 = vmatprep.mubr.msk.f32.mxu1 %vm8916_vm0, %v8915_v0  ;;  %8295 = vmatprep.subr.mxu1 %v8915_v0 }
 0x5e1   : > { %8263 = vmatmul.mubr.f32.vlgmr.msra.gmra.mxu0 %v4069_v26 }
 0x5e2   : > { %8271 = vmatpush3.xpose.msra.mxu0 %v4111_v16  ;;  %8272 = vmatprep.mubr.msk.f32.mxu0 %vm8916_vm0, %v8915_v0 }
 0x5e3   : > { %8280 = vmatprep.subr.mxu0 %v8915_v0 }
 0x5e5   : > { %8273 = vmatmul.mubr.f32.vlgmr.msra.gmra.mxu0 %v4068_v20 }
 0x5e6   : > { %8281 = vmatpush3.msra.mxu0 %v9609_v24  ;;  %8282 = vmatprep.mubr.msk.f32.mxu0 %vm8916_vm0, %v8915_v0 }
 0x5e7   : > { %8290 = vmatprep.subr.mxu0 %v8915_v0 }
 0x689   : > { %v3690_v35 = vpop.f32.mrf.mxu1 }
 0x68b   : > { %v8229_v36 = vpop.f32.mrf.mxu1 }
 0x68d   : > { %v3838_v37 = vpop.f32.mrf.mxu1 }
 0x68f   : > { %v8239_v38 = vpop.f32.mrf.mxu1 }
 0x691   : > { %v3614_v39 = vpop.f32.mrf.mxu0  ;;  %v3984_v41 = vpop.f32.mrf.mxu1 }
 0x692   : > { %v3691_v42 = vadd.f32 %v3690_v35, %v3614_v39 }
 0x693   : > { %v8224_v44 = vpop.f32.mrf.mxu0  ;;  %v8249_v45 = vpop.f32.mrf.mxu1 }
 0x695   : > { %v3764_v46 = vpop.f32.mrf.mxu0  ;;  %v4150_v47 = vpop.f32.mrf.mxu1 }
 0x696   : > { %v3765_v48 = vadd.f32 %v3764_v46, %v3691_v42 }
 0x697   : > { %v8234_v49 = vpop.f32.mrf.mxu0  ;;  %v8259_v50 = vpop.f32.mrf.mxu1 }
 0x698   : > { %v3839_v51 = vadd.f32 %v3838_v37, %v3765_v48 }
 0x699   : > { %v3912_v52 = vpop.f32.mrf.mxu0  ;;  %v4298_v53 = vpop.f32.mrf.mxu1 }
 0x69a   : > { %v3913_v54 = vadd.f32 %v3912_v52, %v3839_v51 }
 0x69b   : > { %v8244_v55 = vpop.f32.mrf.mxu0  ;;  %v8269_v56 = vpop.f32.mrf.mxu1 }
 0x69c   : > { %v9653_v58 = vadd.f32 %v3984_v41, %v3913_v54 }
 0x69d   : > { %v4074_v59 = vpop.f32.mrf.mxu0  ;;  %v4444_v60 = vpop.f32.mrf.mxu1 }
 0x69e   : > { %v4151_v63 = vadd.f32 %v4150_v47, %v4074_v59 }
 0x69f   : > { %v8254_v61 = vpop.f32.mrf.mxu0  ;;  %v8279_v62 = vpop.f32.mrf.mxu1 }
 0x6a1   : > { %v4224_v1 = vpop.f32.mrf.mxu0 }
 0x6a2   : > { %v4225_v2 = vadd.f32 %v4224_v1, %v4151_v63 }
 0x6a3   : > { %v8264_v3 = vpop.f32.mrf.mxu0 }
 0x6a4   : > { %v4299_v4 = vadd.f32 %v4298_v53, %v4225_v2 }
 0x6a5   : > { %v4372_v5 = vpop.f32.mrf.mxu0 }
 0x6a6   : > { %v4373_v6 = vadd.f32 %v4372_v5, %v4299_v4 }
 0x6a7   : > { %v8274_v7 = vpop.f32.mrf.mxu0 }
 0x6a8   : > { %v4445_v8 = vadd.f32 %v4444_v60, %v4373_v6 }
 0x6aa   : > { %v4448_v9 = vmul.f32 0.35355338, %v4445_v8 }
 0x6ac   : > { %v4449_v10 = vsel %vm2605_vm3, -1e+09, %v4448_v9 }
 0x6ad   : > { %v4450_v11 = vsel %vm2151_vm2, %v4449_v10, -inf }
 0x6ae   : > { %4451 = vmax.xlane.f32.xlu0 %v4450_v11 }
 0x737   : > { %v4452_v13 = vpop.xlane.xlu0 %4451 }
 0x738   : > { %v4453_v14 = vsub.f32 %v4449_v10, %v4452_v13 }
 0x73a   : > { %v4454_v15 = vmul.f32 1.442695, %v4453_v14 }
 0x73c   : > { %8706 = vpow2.f32 %v4454_v15 }
 0x749   : > { %v8707_v16 = vpop.eup %8706 }
 0x74a   : > { %v4456_v18 = vsel %vm2151_vm2, %v8707_v16, 0.0 }
 0x74b   : > { %4457 = vadd.xlane.f32.xlu1 %v4456_v18 }
 0x75c   : > { %4921 = vrot.lane.b32.xlu1 %v9497_v57, %s8919_s19 }
 0x760   : > { %4919 = vrot.lane.b32.xlu1 %v9493_v40, %s8919_s19 }
 0x7d4   : > { %v4458_v17 = vpop.xlane.xlu1 %4457 }
 0x7d5   : > { %8708 = vrcp.f32 %v4458_v17 }
 0x7d8   : > { %v4922_v19 = vpop.permute.xlu1 %4921 }
 0x7d9   : > { %v4925_v20 = vsel %vm2151_vm2, %v4922_v19, 0 }
 0x7da   : > { %v4958_v21 = vand.u32 4294901760, %v4925_v20 }
 0x7dc   : > { %v5035_v25 = vsub.f32 %v4925_v20, %v4958_v21  ;;  %v4920_v12 = vpop.permute.xlu1 %4919 }
 0x7dd   : > { %v4923_v32 = vsel %vm2151_vm2, %v4920_v12, 0 }
 0x7de   : > { %v5036_v31 = vand.u32 4294901760, %v5035_v25  ;;  %v4993_v40 = vand.u32 4294901760, %v4923_v32 }
 0x7e0   : > { %v5037_v34 = vsub.f32 %v5035_v25, %v5036_v31  ;;  %v4994_v36 = vsub.f32 %v4923_v32, %v4993_v40 }
 0x7e2   : > { %v8709_v23 = vpop.eup %8708  ;;  %v5038_v38 = vand.u32 4294901760, %v5037_v34  ;;  %v4995_v39 = vand.u32 4294901760, %v4994_v36 }
 0x7e3   : > { %v4460_v26 = vmul.f32 %v8709_v23, %v8707_v16 }
 0x7e5   : > { %v4465_v27 = vsel %vm2151_vm2, %v4460_v26, 0 }
 0x7e6   : > { %v4533_v29 = vand.u32 4294901760, %v4465_v27 }
 0x7e8   : > { %v4534_v57 = vsub.f32 %v4465_v27, %v4533_v29  ;;  %8288 = vmatmul.mubr.f32.vlgmr.msra.gmra.mxu1 %v4533_v29 }
 0x7e9   : > { %8296 = vmatpush3.msra.mxu1 %v9609_v24  ;;  %8297 = vmatprep.mubr.msk.f32.mxu1 %vm8916_vm0, %v8915_v0 }
 0x7ea   : > { %8305 = vmatprep.subr.mxu1 %v8915_v0  ;;  %v4535_v33 = vand.u32 4294901760, %v4534_v57 }
 0x7ec   : > { %8298 = vmatmul.mubr.f32.vlgmr.msra.gmra.mxu1 %v4535_v33  ;;  %v4536_v35 = vsub.f32 %v4534_v57, %v4535_v33 }
 0x7ed   : > { %8306 = vmatpush3.msra.mxu1 %v9609_v24  ;;  %8307 = vmatprep.mubr.msk.f32.mxu1 %vm8916_vm0, %v8915_v0  ;;  %v4996_v24 = vsub.f32 %v4994_v36, %v4995_v39 }
 0x7ee   : > { %8315 = vmatprep.subr.mxu1 %v8915_v0  ;;  %v4537_v37 = vand.u32 4294901760, %v4536_v35 }
 0x7ef   : > { %v4997_v41 = vand.u32 4294901760, %v4996_v24 }
 0x7f0   : > { %8283 = vmatmul.mubr.f32.vlgmr.msra.gmra.mxu0 %v4537_v37  ;;  %8308 = vmatmul.mubr.f32.vlgmr.msra.gmra.mxu1 %v4533_v29 }
 0x7f1   : > { %8291 = vmatpush3.msra.mxu0 %v9615_v28  ;;  %8316 = vmatpush3.xpose.msra.mxu1 %v5038_v38 }
 0x7f2   : > { %8292 = vmatprep.mubr.msk.f32.mxu0 %vm8916_vm0, %v8915_v0  ;;  %8300 = vmatprep.subr.mxu0 %v8915_v0 }
 0x7f3   : > { %8317 = vmatprep.mubr.msk.f32.mxu1 %vm8916_vm0, %v8915_v0  ;;  %8325 = vmatprep.subr.mxu1 %v8915_v0 }
 0x7f4   : > { %8293 = vmatmul.mubr.f32.vlgmr.msra.gmra.mxu0 %v4534_v57  ;;  %8318 = vmatmul.mubr.f32.vlgmr.msra.gmra.mxu1 %v4993_v40 }
 0x7f5   : > { %8301 = vmatpush3.msra.mxu0 %v4576_v30  ;;  %8326 = vmatpush3.xpose.msra.mxu1 %v4958_v21 }
 0x7f6   : > { %8302 = vmatprep.mubr.msk.f32.mxu0 %vm8916_vm0, %v8915_v0  ;;  %8310 = vmatprep.subr.mxu0 %v8915_v0 }
 0x7f7   : > { %8327 = vmatprep.mubr.msk.f32.mxu1 %vm8916_vm0, %v8915_v0  ;;  %8335 = vmatprep.subr.mxu1 %v8915_v0 }
 0x7f8   : > { %8303 = vmatmul.mubr.f32.vlgmr.msra.gmra.mxu0 %v4533_v29  ;;  %8328 = vmatmul.mubr.f32.vlgmr.msra.gmra.mxu1 %v4995_v39  ;;  %v5848_v39 = vld [vmem:[#allocation8 + $0x18] sm:$0xff] }
 0x7f9   : > { %8311 = vmatpush3.xpose.msra.mxu0 %v4958_v21  ;;  %8336 = vmatpush3.xpose.msra.mxu1 %v4958_v21 }
 0x7fa   : > { %8312 = vmatprep.mubr.msk.f32.mxu0 %vm8916_vm0, %v8915_v0  ;;  %8320 = vmatprep.subr.mxu0 %v8915_v0 }
 0x7fb   : > { %8337 = vmatprep.mubr.msk.f32.mxu1 %vm8916_vm0, %v8915_v0  ;;  %8345 = vmatprep.subr.mxu1 %v8915_v0 }
 0x7fc   : > { %8313 = vmatmul.mubr.f32.vlgmr.msra.gmra.mxu0 %v4997_v41  ;;  %8338 = vmatmul.mubr.f32.vlgmr.msra.gmra.mxu1 %v4993_v40  ;;  %v9731_v41 = vand.u32 4294901760, %v5848_v39 }
 0x7fd   : > { %8321 = vmatpush3.xpose.msra.mxu0 %v5035_v25  ;;  %8322 = vmatprep.mubr.msk.f32.mxu0 %vm8916_vm0, %v8915_v0 }
 0x7fe   : > { %8330 = vmatprep.subr.mxu0 %v8915_v0  ;;  %8347 = vmatprep.mubr.msk.f32.mxu1 %vm8916_vm0, %v8915_v0 }
 0x800   : > { %8323 = vmatmul.mubr.f32.vlgmr.msra.gmra.mxu0 %v4994_v36 }
 0x801   : > { %8331 = vmatpush3.xpose.msra.mxu0 %v5036_v31  ;;  %8332 = vmatprep.mubr.msk.f32.mxu0 %vm8916_vm0, %v8915_v0 }
 0x802   : > { %8340 = vmatprep.subr.mxu0 %v8915_v0 }
 0x804   : > { %8333 = vmatmul.mubr.f32.vlgmr.msra.gmra.mxu0 %v4993_v40 }
 0x805   : > { %8342 = vmatprep.mubr.msk.f32.mxu0 %vm8916_vm0, %v8915_v0 }
 0x8a8   : > { %v4615_v28 = vpop.f32.mrf.mxu1 }
 0x8aa   : > { %v8289_v30 = vpop.f32.mrf.mxu1 }
 0x8ac   : > { %v4763_v42 = vpop.f32.mrf.mxu1 }
 0x8ae   : > { %v8299_v44 = vpop.f32.mrf.mxu1 }
 0x8b0   : > { %v4539_v45 = vpop.f32.mrf.mxu0  ;;  %v4909_v46 = vpop.f32.mrf.mxu1 }
 0x8b1   : > { %v4616_v13 = vadd.f32 %v4615_v28, %v4539_v45  ;;  %v5847_v28 = vld [vmem:[#allocation8 + $0x10] sm:$0xff]  ;;  %v5846_v45 = vld [vmem:[#allocation8 + $0x8] sm:$0xff] }
 0x8b2   : > { %v8284_v47 = vpop.f32.mrf.mxu0  ;;  %v8309_v48 = vpop.f32.mrf.mxu1  ;;  %v9736_v44 = vand.u32 4294901760, %v5847_v28 }
 0x8b4   : > { %v4689_v49 = vpop.f32.mrf.mxu0  ;;  %v5075_v50 = vpop.f32.mrf.mxu1  ;;  %v9742_v48 = vsub.f32 %v5847_v28, %v9736_v44 }
 0x8b5   : > { %v4690_v14 = vadd.f32 %v4689_v49, %v4616_v13  ;;  %v9744_v49 = vand.u32 4294901760, %v5846_v45 }
 0x8b6   : > { %v8294_v51 = vpop.f32.mrf.mxu0  ;;  %v8319_v52 = vpop.f32.mrf.mxu1 }
 0x8b7   : > { %v4764_v15 = vadd.f32 %v4763_v42, %v4690_v14  ;;  %v9734_v42 = vsub.f32 %v5848_v39, %v9731_v41 }
 0x8b8   : > { %v4837_v53 = vpop.f32.mrf.mxu0  ;;  %v5223_v54 = vpop.f32.mrf.mxu1 }
 0x8b9   : > { %v4838_v16 = vadd.f32 %v4837_v53, %v4764_v15  ;;  %v5965_v47 = vand.u32 4294901760, %v9734_v42 }
 0x8ba   : > { %v8304_v55 = vpop.f32.mrf.mxu0  ;;  %v8329_v56 = vpop.f32.mrf.mxu1 }
 0x8bb   : > { %v4910_v18 = vadd.f32 %v4909_v46, %v4838_v16  ;;  %v5966_v53 = vsub.f32 %v9734_v42, %v5965_v47  ;;  %v9753_v55 = vsub.f32 %v5846_v45, %v9744_v49 }
 0x8bc   : > { %v4999_v59 = vpop.f32.mrf.mxu0  ;;  %v5369_v60 = vpop.f32.mrf.mxu1 }
 0x8bd   : > { %v5076_v63 = vadd.f32 %v5075_v50, %v4999_v59  ;;  %v5845_v50 = vld [vmem:[#allocation8] sm:$0xff] }
 0x8be   : > { %v8314_v61 = vpop.f32.mrf.mxu0  ;;  %v8339_v62 = vpop.f32.mrf.mxu1  ;;  %v9755_v56 = vand.u32 4294901760, %v5845_v50 }
 0x8bf   : > { %v5967_v61 = vand.u32 4294901760, %v5966_v53 }
 0x8c0   : > { %v5149_v1 = vpop.f32.mrf.mxu0 }
 0x8c1   : > { %v5150_v2 = vadd.f32 %v5149_v1, %v5076_v63  ;;  %v5979_v63 = vand.u32 4294901760, %v9753_v55  ;;  %v9764_v1 = vsub.f32 %v5845_v50, %v9755_v56  ;;  %v6386_v50 = vld [vmem:[#allocation9 + $0x18] sm:$0xff] }
 0x8c2   : > { %v8324_v3 = vpop.f32.mrf.mxu0  ;;  %v9835_v53 = vand.u32 4294901760, %v6386_v50 }
 0x8c3   : > { %v5224_v4 = vadd.f32 %v5223_v54, %v5150_v2  ;;  %v5972_v54 = vand.u32 4294901760, %v9742_v48 }
 0x8c4   : > { %v5297_v5 = vpop.f32.mrf.mxu0 }
 0x8c5   : > { %v5298_v6 = vadd.f32 %v5297_v5, %v5224_v4  ;;  %v5973_v62 = vsub.f32 %v9742_v48, %v5972_v54  ;;  %v5980_v5 = vsub.f32 %v9753_v55, %v5979_v63 }
 0x8c6   : > { %v8334_v7 = vpop.f32.mrf.mxu0 }
 0x8c7   : > { %v5370_v8 = vadd.f32 %v5369_v60, %v5298_v6  ;;  %v5974_v4 = vand.u32 4294901760, %v5973_v62  ;;  %v5986_v6 = vand.u32 4294901760, %v9764_v1 }
 0x8c9   : > { %v5373_v9 = vmul.f32 0.35355338, %v5370_v8 }
 0x8cb   : > { %v5374_v10 = vsel %vm2605_vm3, -1e+09, %v5373_v9  ;;  %v5981_v9 = vand.u32 4294901760, %v5980_v5 }
 0x8cc   : > { %v5375_v11 = vsel %vm2151_vm2, %v5374_v10, -inf }
 0x8cd   : > { %5376 = vmax.xlane.f32.xlu0 %v5375_v11 }
 0x8e3   : > { %5386 = vrot.lane.b32.xlu0 %v9526_v22, %s8919_s19  ;;  %s10272_s19 = sld [smem:[#allocation30_spill]] }
 0x8e7   : > { %3989 = vrot.lane.b32.xlu0 %v9653_v58, %s8920_s12 }
 0x8eb   : > { %4914 = vrot.lane.b32.xlu0 %v4910_v18, %s8921_s27  ;;  %s10277_s27 = sld [smem:[#allocation35_spill]] }
 0x8f1   : > { %s7489_s3 = scalar_lea.hbm %s10277_s27, %s7629_s23 }
 0x956   : > { %v5377_v17 = vpop.xlane.xlu0 %5376 }
 0x957   : > { %v5378_v19 = vsub.f32 %v5374_v10, %v5377_v17  ;;  %v5987_v10 = vsub.f32 %v9764_v1, %v5986_v6 }
 0x959   : > { %v5379_v43 = vmul.f32 1.442695, %v5378_v19  ;;  %v5988_v14 = vand.u32 4294901760, %v5987_v10 }
 0x95a   : > { %v5387_v20 = vpop.permute.xlu0 %5386 }
 0x95b   : > { %8710 = vpow2.f32 %v5379_v43  ;;  %v5423_v21 = vand.u32 4294901760, %v5387_v20 }
 0x95d   : > { %v5500_v23 = vsub.f32 %v5387_v20, %v5423_v21  ;;  %8341 = vmatpush3.msra.mxu0 %v5423_v21 }
 0x95e   : > { %v3990_v25 = vpop.permute.xlu0 %3989  ;;  %8350 = vmatprep.subr.mxu0 %v8915_v0 }
 0x95f   : > { %v5501_v22 = vand.u32 4294901760, %v5500_v23  ;;  %3993 = vst.msk [vmem:[#allocation2] sm:$0xff] %vm3992_vm4, %v3990_v25 }
 0x961   : > { %v5502_v26 = vsub.f32 %v5500_v23, %v5501_v22 }
 0x962   : > { %v4915_v58 = vpop.permute.xlu0 %4914 }
 0x963   : > { %v5503_v12 = vand.u32 4294901760, %v5502_v26  ;;  %4918 = vst.msk [vmem:[#allocation2] sm:$0xff] %vm4917_vm5, %v4915_v58 }
 0x965   : > { %8346 = vmatpush3.msra.mxu1 %v5503_v12 }
 0x966   : > { %8355 = vmatprep.subr.mxu1 %v8915_v0 }
 0x968   : > { %v8711_v27 = vpop.eup %8710 }
 0x969   : > { %v5381_v29 = vsel %vm2151_vm2, %v8711_v27, 0.0 }
 0x96a   : > { %5382 = vadd.xlane.f32.xlu1 %v5381_v29 }
 0x9f3   : > { %v5383_v31 = vpop.xlane.xlu1 %5382 }
 0x9f4   : > { %8712 = vrcp.f32 %v5383_v31 }
 0xa01   : > { %v8713_v32 = vpop.eup %8712 }
 0xa02   : > { %v5385_v57 = vmul.f32 %v8713_v32, %v8711_v27  ;;  %v7621_v32 = vld [vmem:[%s10206_s9] ss:$0 sm:$0xff] }
 0xa04   : > { %v5390_v40 = vsel %vm2151_vm2, %v5385_v57, 0 }
 0xa05   : > { %v5458_v33 = vand.u32 4294901760, %v5390_v40 }
 0xa07   : > { %v5459_v34 = vsub.f32 %v5390_v40, %v5458_v33  ;;  %8348 = vmatmul.mubr.f32.vlgmr.msra.gmra.mxu1 %v5458_v33 }
 0xa08   : > { %8356 = vmatpush3.msra.mxu1 %v5423_v21  ;;  %8357 = vmatprep.mubr.msk.f32.mxu1 %vm8916_vm0, %v8915_v0 }
 0xa09   : > { %8365 = vmatprep.subr.mxu1 %v8915_v0  ;;  %v5460_v35 = vand.u32 4294901760, %v5459_v34 }
 0xa0b   : > { %8358 = vmatmul.mubr.f32.vlgmr.msra.gmra.mxu1 %v5460_v35  ;;  %v5461_v36 = vsub.f32 %v5459_v34, %v5460_v35 }
 0xa0c   : > { %8366 = vmatpush3.msra.mxu1 %v5423_v21  ;;  %8367 = vmatprep.mubr.msk.f32.mxu1 %vm8916_vm0, %v8915_v0 }
 0xa0d   : > { %v5462_v37 = vand.u32 4294901760, %v5461_v36  ;;  %8381 = vmatprep.subr.mxu1 %v8915_v0 }
 0xa0f   : > { %8343 = vmatmul.mubr.f32.vlgmr.msra.gmra.mxu0 %v5462_v37  ;;  %8368 = vmatmul.mubr.f32.vlgmr.msra.gmra.mxu1 %v5458_v33 }
 0xa10   : > { %8351 = vmatpush3.msra.mxu0 %v5500_v23  ;;  %8352 = vmatprep.mubr.msk.f32.mxu0 %vm8916_vm0, %v8915_v0 }
 0xa11   : > { %8360 = vmatprep.subr.mxu0 %v8915_v0  ;;  %8389 = vmatprep.mubr.msk.f32.mxu1 %vm8916_vm0, %v8915_v0 }
 0xa12   : > { %8382 = vmatpush3.msra.mxu1 %v5967_v61 }
 0xa13   : > { %8353 = vmatmul.mubr.f32.vlgmr.msra.gmra.mxu0 %v5459_v34  ;;  %8383 = vmatprep.subr.mxu1 %v8915_v0 }
 0xa14   : > { %8361 = vmatpush3.msra.mxu0 %v5501_v22  ;;  %8362 = vmatprep.mubr.msk.f32.mxu0 %vm8916_vm0, %v8915_v0 }
 0xa15   : > { %8370 = vmatprep.subr.mxu0 %v8915_v0  ;;  %8384 = vmatpush3.msra.mxu1 %v5974_v4 }
 0xa16   : > { %8385 = vmatprep.subr.mxu1 %v8915_v0 }
 0xa17   : > { %8363 = vmatmul.mubr.f32.vlgmr.msra.gmra.mxu0 %v5458_v33  ;;  %8386 = vmatpush3.msra.mxu1 %v5981_v9 }
 0xa18   : > { %8378 = vmatprep.mubr.msk.f32.mxu0 %vm8916_vm0, %v8915_v0  ;;  %8371 = vmatpush3.msra.mxu0 %v9731_v41 }
 0xa19   : > { %8372 = vmatprep.subr.mxu0 %v8915_v0  ;;  %8387 = vmatprep.subr.mxu1 %v8915_v0 }
 0xa1a   : > { %8373 = vmatpush3.msra.mxu0 %v9736_v44  ;;  %8388 = vmatpush3.msra.mxu1 %v5988_v14 }
 0xa1b   : > { %8374 = vmatprep.subr.mxu0 %v8915_v0  ;;  %8403 = vmatprep.subr.mxu1 %v8915_v0 }
 0xa1c   : > { %8375 = vmatpush3.msra.mxu0 %v9744_v49 }
 0xa1d   : > { %8376 = vmatprep.subr.mxu0 %v8915_v0 }
 0xa1e   : > { %8377 = vmatpush3.msra.mxu0 %v9755_v56 }
 0xa1f   : > { %8392 = vmatprep.subr.mxu0 %v8915_v0 }
 0xac7   : > { %v5540_v38 = vpop.f32.mrf.mxu1 }
 0xac9   : > { %v8349_v24 = vpop.f32.mrf.mxu1 }
 0xacb   : > { %v5688_v30 = vpop.f32.mrf.mxu1 }
 0xacd   : > { %v8359_v46 = vpop.f32.mrf.mxu1 }
 0xacf   : > { %v5464_v51 = vpop.f32.mrf.mxu0  ;;  %v5834_v52 = vpop.f32.mrf.mxu1 }
 0xad0   : > { %v5541_v2 = vadd.f32 %v5540_v38, %v5464_v51  ;;  %v6385_v51 = vld [vmem:[#allocation9 + $0x10] sm:$0xff] }
 0xad1   : > { %v8344_v59 = vpop.f32.mrf.mxu0  ;;  %v8369_v60 = vpop.f32.mrf.mxu1 }
 0xad2   : > { %v9844_v60 = vsub.f32 %v6386_v50, %v9835_v53 }
 0xad3   : > { %v5614_v3 = vpop.f32.mrf.mxu0 }
 0xad4   : > { %v5615_v7 = vadd.f32 %v5614_v3, %v5541_v2 }
 0xad5   : > { %v8354_v8 = vpop.f32.mrf.mxu0 }
 0xad6   : > { %v5689_v11 = vadd.f32 %v5688_v30, %v5615_v7  ;;  %v8722_v30 = vld [vmem:[%s582_s29] sm:$0xff]  ;;  %s8923_s29 = smov [#allocation11]  }
 0xad7   : > { %v5762_v13 = vpop.f32.mrf.mxu0 }
 0xad8   : > { %v5763_v15 = vadd.f32 %v5762_v13, %v5689_v11 }
 0xad9   : > { %v8364_v16 = vpop.f32.mrf.mxu0 }
 0xada   : > { %v5835_v18 = vadd.f32 %v5834_v52, %v5763_v15  ;;  %v6384_v52 = vld [vmem:[#allocation9 + $0x8] sm:$0xff] }
 0xadc   : > { %5839 = vrot.lane.b32.xlu0 %v5835_v18, %s8922_s25  ;;  %s10273_s25 = sld [smem:[#allocation32_spill]] }
 0xb4e   : > { %v5840_v17 = vpop.permute.xlu0 %5839 }
 0xb4f   : > { %5843 = vst.msk [vmem:[#allocation2] sm:$0xff] %vm5842_vm6, %v5840_v17 }
 0xb56   : > { %v5844_v19 = vld [vmem:[#allocation2] sm:$0xff] }
 0xb57   : > { %v5857_v43 = vsel %vm670_vm1, %v5844_v19, 0 }
 0xb58   : > { %v5928_v20 = vand.u32 4294901760, %v5857_v43 }
 0xb5a   : > { %v5929_v21 = vsub.f32 %v5857_v43, %v5928_v20  ;;  %8390 = vmatmul.mubr.f32.vlgmr.msra.gmra.mxu1 %v5928_v20 }
 0xb5b   : > { %8404 = vmatpush3.msra.mxu1 %v9731_v41  ;;  %8411 = vmatprep.mubr.msk.f32.mxu1 %vm8916_vm0, %v8915_v0 }
 0xb5c   : > { %8405 = vmatprep.subr.mxu1 %v8915_v0  ;;  %v5930_v23 = vand.u32 4294901760, %v5929_v21 }
 0xb5d   : > { %8406 = vmatpush3.msra.mxu1 %v9736_v44 }
 0xb5e   : > { %8407 = vmatprep.subr.mxu1 %v8915_v0  ;;  %v5931_v25 = vsub.f32 %v5929_v21, %v5930_v23 }
 0xb5f   : > { %8408 = vmatpush3.msra.mxu1 %v9744_v49 }
 0xb60   : > { %8409 = vmatprep.subr.mxu1 %v8915_v0  ;;  %v5932_v22 = vand.u32 4294901760, %v5931_v25 }
 0xb61   : > { %8410 = vmatpush3.msra.mxu1 %v9755_v56 }
 0xb62   : > { %8412 = vmatmul.mubr.f32.vlgmr.msra.gmra.mxu1 %v5930_v23  ;;  %8425 = vmatprep.subr.mxu1 %v8915_v0  ;;  %v7622_v23 = vld [vmem:[%s10207_s10] ss:$0 sm:$0xff] }
 0xb63   : > { %8379 = vmatmul.mubr.f32.vlgmr.msra.gmra.mxu0 %v5932_v22  ;;  %8426 = vmatpush3.msra.mxu1 %v9731_v41  ;;  %v7623_v22 = vld [vmem:[%s10208_s11] ss:$0 sm:$0xff] }
 0xb64   : > { %8393 = vmatpush3.msra.mxu0 %v9734_v42  ;;  %8427 = vmatprep.subr.mxu1 %v8915_v0 }
 0xb65   : > { %8394 = vmatprep.subr.mxu0 %v8915_v0  ;;  %8428 = vmatpush3.msra.mxu1 %v9736_v44 }
 0xb66   : > { %8395 = vmatpush3.msra.mxu0 %v9742_v48  ;;  %8429 = vmatprep.subr.mxu1 %v8915_v0 }
 0xb67   : > { %8396 = vmatprep.subr.mxu0 %v8915_v0  ;;  %8430 = vmatpush3.msra.mxu1 %v9744_v49 }
 0xb68   : > { %8397 = vmatpush3.msra.mxu0 %v9753_v55  ;;  %8431 = vmatprep.subr.mxu1 %v8915_v0  ;;  %v9839_v55 = vand.u32 4294901760, %v6384_v52 }
 0xb69   : > { %8398 = vmatprep.subr.mxu0 %v8915_v0  ;;  %8400 = vmatprep.mubr.msk.f32.mxu0 %vm8916_vm0, %v8915_v0 }
 0xb6a   : > { %8399 = vmatpush3.msra.mxu0 %v9764_v1  ;;  %8432 = vmatpush3.msra.mxu1 %v9755_v56  ;;  %v6383_v56 = vld [vmem:[#allocation9] sm:$0xff]  ;;  %v9850_v62 = vsub.f32 %v6384_v52, %v9839_v55  ;;  %v6503_v1 = vand.u32 4294901760, %v9844_v60 }
 0xb6b   : > { %8433 = vmatprep.mubr.msk.f32.mxu1 %vm8916_vm0, %v8915_v0  ;;  %8401 = vmatmul.mubr.f32.vlgmr.msra.gmra.mxu0 %v5929_v21  ;;  %v9841_v59 = vand.u32 4294901760, %v6383_v56 }
 0xb6c   : > { %8414 = vmatprep.subr.mxu0 %v8915_v0  ;;  %8434 = vmatmul.mubr.f32.vlgmr.msra.gmra.mxu1 %v5928_v20  ;;  %v6517_v3 = vand.u32 4294901760, %v9850_v62  ;;  %v6504_v5 = vsub.f32 %v9844_v60, %v6503_v1 }
 0xb6d   : > { %8415 = vmatpush3.msra.mxu0 %v5965_v47  ;;  %8422 = vmatprep.mubr.msk.f32.mxu0 %vm8916_vm0, %v8915_v0 }
 0xb6e   : > { %8416 = vmatprep.subr.mxu0 %v8915_v0  ;;  %8447 = vmatprep.subr.mxu1 %v8915_v0  ;;  %v6518_v7 = vsub.f32 %v9850_v62, %v6517_v3  ;;  %v6505_v8 = vand.u32 4294901760, %v6504_v5 }
 0xb6f   : > { %8417 = vmatpush3.msra.mxu0 %v5972_v54  ;;  %8455 = vmatprep.mubr.msk.f32.mxu1 %vm8916_vm0, %v8915_v0  ;;  %v9837_v54 = vand.u32 4294901760, %v6385_v51 }
 0xb70   : > { %8418 = vmatprep.subr.mxu0 %v8915_v0  ;;  %8448 = vmatpush3.msra.mxu1 %v6505_v8  ;;  %v6519_v11 = vand.u32 4294901760, %v6518_v7 }
 0xb71   : > { %8419 = vmatpush3.msra.mxu0 %v5979_v63  ;;  %v9847_v61 = vsub.f32 %v6385_v51, %v9837_v54  ;;  %v9854_v63 = vsub.f32 %v6383_v56, %v9841_v59  ;;  %8449 = vmatprep.subr.mxu1 %v8915_v0  ;;  %v6885_v51 = vld [vmem:[%s10271_s15 + $0x10] sm:$0xff] }
 0xb72   : > { %8420 = vmatprep.subr.mxu0 %v8915_v0 }
 0xb73   : > { %8421 = vmatpush3.msra.mxu0 %v5986_v6  ;;  %v6510_v2 = vand.u32 4294901760, %v9847_v61  ;;  %v6524_v4 = vand.u32 4294901760, %v9854_v63 }
 0xb74   : > { %8423 = vmatmul.mubr.f32.vlgmr.msra.gmra.mxu0 %v5928_v20  ;;  %8436 = vmatprep.subr.mxu0 %v8915_v0 }
 0xb75   : > { %8444 = vmatprep.mubr.msk.f32.mxu0 %vm8916_vm0, %v8915_v0  ;;  %8437 = vmatpush3.msra.mxu0 %v9835_v53  ;;  %v6511_v6 = vsub.f32 %v9847_v61, %v6510_v2  ;;  %v6525_v10 = vsub.f32 %v9854_v63, %v6524_v4 }
 0xb76   : > { %8438 = vmatprep.subr.mxu0 %v8915_v0 }
 0xb77   : > { %8439 = vmatpush3.msra.mxu0 %v9837_v54  ;;  %v6512_v9 = vand.u32 4294901760, %v6511_v6  ;;  %v6526_v13 = vand.u32 4294901760, %v6525_v10 }
 0xb78   : > { %8440 = vmatprep.subr.mxu0 %v8915_v0 }
 0xb79   : > { %8441 = vmatpush3.msra.mxu0 %v9839_v55  ;;  %8450 = vmatpush3.msra.mxu1 %v6512_v9 }
 0xb7a   : > { %8442 = vmatprep.subr.mxu0 %v8915_v0  ;;  %8451 = vmatprep.subr.mxu1 %v8915_v0 }
 0xb7b   : > { %8443 = vmatpush3.msra.mxu0 %v9841_v59  ;;  %8452 = vmatpush3.msra.mxu1 %v6519_v11 }
 0xb7c   : > { %8458 = vmatprep.subr.mxu0 %v8915_v0  ;;  %8453 = vmatprep.subr.mxu1 %v8915_v0 }
 0xb7d   : > { %8454 = vmatpush3.msra.mxu1 %v6526_v13 }
 0xb7e   : > { %8469 = vmatprep.subr.mxu1 %v8915_v0 }
 0xc1a   : > { %v6025_v26 = vpop.f32.mrf.mxu1 }
 0xc1c   : > { %v8391_v58 = vpop.f32.mrf.mxu1 }
 0xc22   : > { %v6182_v12 = vpop.f32.mrf.mxu1 }
 0xc23   : > { %v5934_v27 = vpop.f32.mrf.mxu0 }
 0xc24   : > { %v8413_v29 = vpop.f32.mrf.mxu1  ;;  %v5935_v57 = vadd.f32 %v7621_v32, %v5934_v27 }
 0xc25   : > { %v8380_v31 = vpop.f32.mrf.mxu0 }
 0xc26   : > { %v6026_v34 = vadd.f32 %v6025_v26, %v5935_v57 }
 0xc2b   : > { %v6105_v40 = vpop.f32.mrf.mxu0 }
 0xc2c   : > { %v6340_v33 = vpop.f32.mrf.mxu1  ;;  %v6106_v37 = vadd.f32 %v6105_v40, %v6026_v34  ;;  %v6890_v40 = vld [vmem:[%s10271_s15 + $0x38] sm:$0xff]  ;;  %v6889_v34 = vld [vmem:[%s10271_s15 + $0x30] sm:$0xff] }
 0xc2d   : > { %v8402_v35 = vpop.f32.mrf.mxu0 }
 0xc2e   : > { %v8435_v36 = vpop.f32.mrf.mxu1  ;;  %v6183_v38 = vadd.f32 %v6182_v12, %v6106_v37  ;;  %v6888_v37 = vld [vmem:[%s10271_s15 + $0x28] sm:$0xff] }
 0xc2f   : > { %v9952_v36 = vand.u32 4294901760, %v6889_v34 }
 0xc34   : > { %v6265_v39 = vpop.f32.mrf.mxu0 }
 0xc35   : > { %v6266_v24 = vadd.f32 %v6265_v39, %v6183_v38  ;;  %v9961_v39 = vsub.f32 %v6889_v34, %v9952_v36 }
 0xc36   : > { %v8424_v41 = vpop.f32.mrf.mxu0 }
 0xc37   : > { %v6341_v28 = vadd.f32 %v6340_v33, %v6266_v24  ;;  %v9944_v33 = vand.u32 4294901760, %v6890_v40  ;;  %v9963_v24 = vand.u32 4294901760, %v6888_v37  ;;  %v6887_v41 = vld [vmem:[%s10271_s15 + $0x20] sm:$0xff] }
 0xc39   : > { %v6344_v42 = vadd.f32 %v8722_v30, %v6341_v28  ;;  %v9950_v35 = vsub.f32 %v6890_v40, %v9944_v33  ;;  %v7011_v30 = vand.u32 4294901760, %v9961_v39 }
 0xc3b   : > { %v6347_v44 = vsel %vm670_vm1, %v6344_v42, 0.0  ;;  %v7004_v38 = vand.u32 4294901760, %v9950_v35 }
 0xc3c   : > { %6348 = vadd.xlane.f32.xlu1 %v6347_v44  ;;  %v9977_v44 = vand.u32 4294901760, %v6887_v41 }
 0xc3d   : > { %v7005_v28 = vsub.f32 %v9950_v35, %v7004_v38 }
 0xcc5   : > { %v6349_v45 = vpop.xlane.xlu1 %6348 }
 0xcc6   : > { %v6351_v46 = vmul.f32 0.03125, %v6349_v45  ;;  %v6886_v45 = vld [vmem:[%s10271_s15 + $0x18] sm:$0xff] }
 0xcc7   : > { %v9992_v50 = vand.u32 4294901760, %v6886_v45 }
 0xcc8   : > { %v6352_v47 = vsub.f32 %v6344_v42, %v6351_v46  ;;  %v9975_v42 = vsub.f32 %v6888_v37, %v9963_v24  ;;  %v7006_v46 = vand.u32 4294901760, %v7005_v28 }
 0xcc9   : > { %v10006_v56 = vsub.f32 %v6886_v45, %v9992_v50 }
 0xcca   : > { %v6353_v48 = vmul.f32 %v6352_v47, %v6352_v47 }
 0xccc   : > { %v6354_v49 = vsel %vm670_vm1, %v6353_v48, 0.0  ;;  %v7018_v48 = vand.u32 4294901760, %v9975_v42 }
 0xccd   : > { %6355 = vadd.xlane.f32.xlu0 %v6354_v49  ;;  %v9989_v49 = vsub.f32 %v6887_v41, %v9977_v44 }
 0xd56   : > { %v6356_v14 = vpop.xlane.xlu0 %6355 }
 0xd57   : > { %v6358_v15 = vmul.f32 0.032258064, %v6356_v14 }
 0xd59   : > { %8714 = vrsqrt.f32 %v6358_v15  ;;  %vm6361_vm7 = vcmp.eq.f32.partialorder %v6358_v15, inf  ;;  %v6364_v17 = vand.u32 2147483648, %v6358_v15  ;;  %vm6363_vm8 = vcmp.eq.f32.partialorder %v6358_v15, 0.0 }
 0xd66   : > { %v8715_v16 = vpop.eup %8714 }
 0xd67   : > { %v6360_v18 = vmul.f32 %v8715_v16, %v6358_v15 }
 0xd69   : > { %v6362_v19 = vsel %vm6361_vm7, %v6358_v15, %v6360_v18 }
 0xd6a   : > { %v6365_v43 = vsel %vm6363_vm8, %v6364_v17, %v6362_v19 }
 0xd6b   : > { %v6366_v20 = vadd.f32 1e-09, %v6365_v43 }
 0xd6d   : > { %8716 = vrcp.f32 %v6366_v20 }
 0xd7a   : > { %v8717_v21 = vpop.eup %8716 }
 0xd7b   : > { %v6368_v25 = vmul.f32 %v8717_v21, %v6352_v47  ;;  %v7012_v47 = vsub.f32 %v9961_v39, %v7011_v30 }
 0xd7d   : > { %v6375_v26 = vmul.f32 %v7622_v23, %v6368_v25  ;;  %v7013_v52 = vand.u32 4294901760, %v7012_v47 }
 0xd7f   : > { %v9889_v58 = vadd.f32 %v7623_v22, %v6375_v26  ;;  %v7624_v22 = vld [vmem:[%s10272_s19] ss:$0 sm:$0xff] }
 0xd81   : > { %v6395_v12 = vsel %vm670_vm1, %v9889_v58, 0 }
 0xd82   : > { %v6466_v27 = vand.u32 4294901760, %v6395_v12 }
 0xd84   : > { %v6467_v29 = vsub.f32 %v6395_v12, %v6466_v27  ;;  %8456 = vmatmul.mubr.f32.vlgmr.msra.gmra.mxu1 %v6466_v27 }
 0xd85   : > { %8470 = vmatpush3.msra.mxu1 %v9835_v53  ;;  %8477 = vmatprep.mubr.msk.f32.mxu1 %vm8916_vm0, %v8915_v0 }
 0xd86   : > { %8471 = vmatprep.subr.mxu1 %v8915_v0  ;;  %v6468_v31 = vand.u32 4294901760, %v6467_v29 }
 0xd87   : > { %8472 = vmatpush3.msra.mxu1 %v9837_v54 }
 0xd88   : > { %8473 = vmatprep.subr.mxu1 %v8915_v0  ;;  %v6469_v32 = vsub.f32 %v6467_v29, %v6468_v31 }
 0xd89   : > { %8474 = vmatpush3.msra.mxu1 %v9839_v55 }
 0xd8a   : > { %8475 = vmatprep.subr.mxu1 %v8915_v0  ;;  %v6470_v57 = vand.u32 4294901760, %v6469_v32 }
 0xd8b   : > { %8476 = vmatpush3.msra.mxu1 %v9841_v59 }
 0xd8c   : > { %8478 = vmatmul.mubr.f32.vlgmr.msra.gmra.mxu1 %v6468_v31  ;;  %8491 = vmatprep.subr.mxu1 %v8915_v0 }
 0xd8d   : > { %8445 = vmatmul.mubr.f32.vlgmr.msra.gmra.mxu0 %v6470_v57  ;;  %8492 = vmatpush3.msra.mxu1 %v9835_v53  ;;  %v7019_v53 = vsub.f32 %v9975_v42, %v7018_v48 }
 0xd8e   : > { %8459 = vmatpush3.msra.mxu0 %v9844_v60  ;;  %8493 = vmatprep.subr.mxu1 %v8915_v0 }
 0xd8f   : > { %8460 = vmatprep.subr.mxu0 %v8915_v0  ;;  %8494 = vmatpush3.msra.mxu1 %v9837_v54  ;;  %v7025_v54 = vand.u32 4294901760, %v9989_v49  ;;  %v7020_v60 = vand.u32 4294901760, %v7019_v53 }
 0xd90   : > { %8461 = vmatpush3.msra.mxu0 %v9847_v61  ;;  %8495 = vmatprep.subr.mxu1 %v8915_v0 }
 0xd91   : > { %8462 = vmatprep.subr.mxu0 %v8915_v0  ;;  %8496 = vmatpush3.msra.mxu1 %v9839_v55  ;;  %v10002_v55 = vand.u32 4294901760, %v6885_v51  ;;  %v7026_v61 = vsub.f32 %v9989_v49, %v7025_v54 }
 0xd92   : > { %8463 = vmatpush3.msra.mxu0 %v9850_v62  ;;  %8497 = vmatprep.subr.mxu1 %v8915_v0 }
 0xd93   : > { %8464 = vmatprep.subr.mxu0 %v8915_v0  ;;  %8466 = vmatprep.mubr.msk.f32.mxu0 %vm8916_vm0, %v8915_v0  ;;  %v10016_v62 = vsub.f32 %v6885_v51, %v10002_v55 }
 0xd94   : > { %8465 = vmatpush3.msra.mxu0 %v9854_v63  ;;  %8498 = vmatpush3.msra.mxu1 %v9841_v59  ;;  %v6884_v59 = vld [vmem:[%s10271_s15 + $0x8] sm:$0xff] }
 0xd95   : > { %8499 = vmatprep.mubr.msk.f32.mxu1 %vm8916_vm0, %v8915_v0  ;;  %8467 = vmatmul.mubr.f32.vlgmr.msra.gmra.mxu0 %v6467_v29  ;;  %v10018_v63 = vand.u32 4294901760, %v6884_v59 }
 0xd96   : > { %8480 = vmatprep.subr.mxu0 %v8915_v0  ;;  %8500 = vmatmul.mubr.f32.vlgmr.msra.gmra.mxu1 %v6466_v27 }
 0xd97   : > { %8481 = vmatpush3.msra.mxu0 %v6503_v1  ;;  %8488 = vmatprep.mubr.msk.f32.mxu0 %vm8916_vm0, %v8915_v0  ;;  %v7032_v1 = vand.u32 4294901760, %v10006_v56  ;;  %v10029_v5 = vsub.f32 %v6884_v59, %v10018_v63 }
 0xd98   : > { %8482 = vmatprep.subr.mxu0 %v8915_v0  ;;  %8521 = vmatprep.subr.mxu1 %v8915_v0 }
 0xd99   : > { %8483 = vmatpush3.msra.mxu0 %v6510_v2  ;;  %8537 = vmatprep.mubr.msk.f32.mxu1 %vm8916_vm0, %v8915_v0  ;;  %v6883_v2 = vld [vmem:[%s10271_s15] sm:$0xff]  ;;  %v7033_v7 = vsub.f32 %v10006_v56, %v7032_v1  ;;  %v7046_v9 = vand.u32 4294901760, %v10029_v5 }
 0xd9a   : > { %8484 = vmatprep.subr.mxu0 %v8915_v0  ;;  %8522 = vmatpush3.msra.mxu1 %v7006_v46  ;;  %v10031_v6 = vand.u32 4294901760, %v6883_v2 }
 0xd9b   : > { %8485 = vmatpush3.msra.mxu0 %v6517_v3  ;;  %8523 = vmatprep.subr.mxu1 %v8915_v0  ;;  %v7027_v3 = vand.u32 4294901760, %v7026_v61  ;;  %v7034_v11 = vand.u32 4294901760, %v7033_v7  ;;  %v7047_v14 = vsub.f32 %v10029_v5, %v7046_v9 }
 0xd9c   : > { %8486 = vmatprep.subr.mxu0 %v8915_v0  ;;  %8524 = vmatpush3.msra.mxu1 %v7013_v52  ;;  %v10044_v10 = vsub.f32 %v6883_v2, %v10031_v6 }
 0xd9d   : > { %8487 = vmatpush3.msra.mxu0 %v6524_v4  ;;  %8525 = vmatprep.subr.mxu1 %v8915_v0  ;;  %v7039_v4 = vand.u32 4294901760, %v10016_v62  ;;  %v7048_v16 = vand.u32 4294901760, %v7047_v14 }
 0xd9e   : > { %8489 = vmatmul.mubr.f32.vlgmr.msra.gmra.mxu0 %v6466_v27  ;;  %8502 = vmatprep.subr.mxu0 %v8915_v0  ;;  %v7053_v15 = vand.u32 4294901760, %v10044_v10 }
 0xd9f   : > { %8518 = vmatprep.mubr.msk.f32.mxu0 %vm8916_vm0, %v8915_v0  ;;  %8503 = vmatpush3.msra.mxu0 %v9944_v33  ;;  %v7040_v8 = vsub.f32 %v10016_v62, %v7039_v4 }
 0xda0   : > { %8504 = vmatprep.subr.mxu0 %v8915_v0  ;;  %8526 = vmatpush3.msra.mxu1 %v7020_v60  ;;  %v7054_v18 = vsub.f32 %v10044_v10, %v7053_v15 }
 0xda1   : > { %8505 = vmatpush3.msra.mxu0 %v9952_v36  ;;  %8527 = vmatprep.subr.mxu1 %v8915_v0  ;;  %v7041_v13 = vand.u32 4294901760, %v7040_v8 }
 0xda2   : > { %8506 = vmatprep.subr.mxu0 %v8915_v0  ;;  %8528 = vmatpush3.msra.mxu1 %v7027_v3  ;;  %v7055_v17 = vand.u32 4294901760, %v7054_v18 }
 0xda3   : > { %8507 = vmatpush3.msra.mxu0 %v9963_v24  ;;  %8529 = vmatprep.subr.mxu1 %v8915_v0 }
 0xda4   : > { %8508 = vmatprep.subr.mxu0 %v8915_v0  ;;  %8530 = vmatpush3.msra.mxu1 %v7034_v11 }
 0xda5   : > { %8509 = vmatpush3.msra.mxu0 %v9977_v44  ;;  %8531 = vmatprep.subr.mxu1 %v8915_v0 }
 0xda6   : > { %8510 = vmatprep.subr.mxu0 %v8915_v0  ;;  %8532 = vmatpush3.msra.mxu1 %v7041_v13 }
 0xda7   : > { %8511 = vmatpush3.msra.mxu0 %v9992_v50  ;;  %8533 = vmatprep.subr.mxu1 %v8915_v0 }
 0xda8   : > { %8512 = vmatprep.subr.mxu0 %v8915_v0  ;;  %8534 = vmatpush3.msra.mxu1 %v7048_v16  ;;  %v7626_v16 = vld [vmem:[%s10275_s16] ss:$0 sm:$0xff]  ;;  %s8835_s16 = sshll.u32 %s8923_s29, 4  ;;  %s8836_s16 = int_to_ptr.vmem [resolvable:$false] %s8835_s16 }
 0xda9   : > { %8513 = vmatpush3.msra.mxu0 %v10002_v55  ;;  %8535 = vmatprep.subr.mxu1 %v8915_v0  ;;  %s8837_s0 = scalar_lea.vmem %s8836_s16, 256  ;;  %p8838_p5 = scmp.lt.s32.totalorder %s7492_s20, %s8836_s16 }
 0xdaa   : > { %8514 = vmatprep.subr.mxu0 %v8915_v0  ;;  %8536 = vmatpush3.msra.mxu1 %v7055_v17  ;;  %v7627_v17 = vld [vmem:[%s10276_s14] ss:$0 sm:$0xff]  ;;  %p8839_p1 = scmp.lt.s32.totalorder %s8837_s0, %s8831_s2 }
 0xdab   : > { %8515 = vmatpush3.msra.mxu0 %v10018_v63  ;;  %8559 = vmatprep.subr.mxu1 %v8915_v0 }
 0xdac   : > { %8516 = vmatprep.subr.mxu0 %v8915_v0  ;;  %p8840_p3 = por %p8839_p1, %p8838_p5 }
 0xdad   : > { %8517 = vmatpush3.msra.mxu0 %v10031_v6 }
 0xdae   : > { %8540 = vmatprep.subr.mxu0 %v8915_v0  ;;  %p8841_p4 = pnand %p8840_p3, %p8834_p13 }
 0xe44   : > { %v6563_v19 = vpop.f32.mrf.mxu1 }
 0xe46   : > { %v8457_v43 = vpop.f32.mrf.mxu1 }
 0xe4c   : > { %v6720_v20 = vpop.f32.mrf.mxu1 }
 0xe4d   : > { %v6472_v21 = vpop.f32.mrf.mxu0 }
 0xe4e   : > { %v8479_v23 = vpop.f32.mrf.mxu1  ;;  %v6473_v26 = vadd.f32 %v7624_v22, %v6472_v21 }
 0xe4f   : > { %v8446_v25 = vpop.f32.mrf.mxu0 }
 0xe50   : > { %v6564_v29 = vadd.f32 %v6563_v19, %v6473_v26 }
 0xe55   : > { %v6643_v12 = vpop.f32.mrf.mxu0 }
 0xe56   : > { %v6878_v27 = vpop.f32.mrf.mxu1  ;;  %v6644_v57 = vadd.f32 %v6643_v12, %v6564_v29 }
 0xe57   : > { %v8468_v31 = vpop.f32.mrf.mxu0 }
 0xe58   : > { %v8501_v32 = vpop.f32.mrf.mxu1  ;;  %v6721_v40 = vadd.f32 %v6720_v20, %v6644_v57 }
 0xe5e   : > { %v6803_v34 = vpop.f32.mrf.mxu0 }
 0xe5f   : > { %v6804_v37 = vadd.f32 %v6803_v34, %v6721_v40 }
 0xe60   : > { %v8490_v41 = vpop.f32.mrf.mxu0 }
 0xe61   : > { %v6879_v28 = vadd.f32 %v6878_v27, %v6804_v37 }
 0xe63   : > { %v6882_v45 = vmax.f32 %v6879_v28, 0.0 }
 0xe65   : > { %v6900_v46 = vsel %vm6898_vm9, %v6882_v45, 0 }
 0xe66   : > { %v10064_v47 = vand.u32 4294901760, %v6900_v46 }
 0xe68   : > { %v6976_v51 = vsub.f32 %v6900_v46, %v10064_v47  ;;  %8538 = vmatmul.mubr.f32.vlgmr.msra.gmra.mxu1 %v10064_v47 }
 0xe69   : > { %8560 = vmatpush3.msra.mxu1 %v9944_v33  ;;  %8575 = vmatprep.mubr.msk.f32.mxu1 %vm8916_vm0, %v8915_v0 }
 0xe6a   : > { %8561 = vmatprep.subr.mxu1 %v8915_v0  ;;  %v6977_v52 = vand.u32 4294901760, %v6976_v51 }
 0xe6b   : > { %8562 = vmatpush3.msra.mxu1 %v9952_v36 }
 0xe6c   : > { %8563 = vmatprep.subr.mxu1 %v8915_v0  ;;  %v6978_v53 = vsub.f32 %v6976_v51, %v6977_v52 }
 0xe6d   : > { %8564 = vmatpush3.msra.mxu1 %v9963_v24 }
 0xe6e   : > { %8565 = vmatprep.subr.mxu1 %v8915_v0  ;;  %v6979_v59 = vand.u32 4294901760, %v6978_v53 }
 0xe6f   : > { %8566 = vmatpush3.msra.mxu1 %v9977_v44 }
 0xe70   : > { %8567 = vmatprep.subr.mxu1 %v8915_v0  ;;  %8519 = vmatmul.mubr.f32.vlgmr.msra.gmra.mxu0 %v6979_v59 }
 0xe71   : > { %8541 = vmatpush3.msra.mxu0 %v9950_v35  ;;  %8568 = vmatpush3.msra.mxu1 %v9992_v50 }
 0xe72   : > { %8542 = vmatprep.subr.mxu0 %v8915_v0  ;;  %8569 = vmatprep.subr.mxu1 %v8915_v0 }
 0xe73   : > { %8543 = vmatpush3.msra.mxu0 %v9961_v39  ;;  %8570 = vmatpush3.msra.mxu1 %v10002_v55 }
 0xe74   : > { %8544 = vmatprep.subr.mxu0 %v8915_v0  ;;  %8571 = vmatprep.subr.mxu1 %v8915_v0 }
 0xe75   : > { %8545 = vmatpush3.msra.mxu0 %v9975_v42  ;;  %8572 = vmatpush3.msra.mxu1 %v10018_v63 }
 0xe76   : > { %8546 = vmatprep.subr.mxu0 %v8915_v0  ;;  %8573 = vmatprep.subr.mxu1 %v8915_v0 }
 0xe77   : > { %8547 = vmatpush3.msra.mxu0 %v9989_v49  ;;  %8574 = vmatpush3.msra.mxu1 %v10031_v6 }
 0xe78   : > { %8548 = vmatprep.subr.mxu0 %v8915_v0  ;;  %8576 = vmatmul.mubr.f32.vlgmr.msra.gmra.mxu1 %v6977_v52 }
 0xe79   : > { %8597 = vmatprep.subr.mxu1 %v8915_v0  ;;  %8549 = vmatpush3.msra.mxu0 %v10006_v56 }
 0xe7a   : > { %8598 = vmatpush3.msra.mxu1 %v9944_v33  ;;  %8550 = vmatprep.subr.mxu0 %v8915_v0 }
 0xe7b   : > { %8599 = vmatprep.subr.mxu1 %v8915_v0  ;;  %8551 = vmatpush3.msra.mxu0 %v10016_v62 }
 0xe7c   : > { %8600 = vmatpush3.msra.mxu1 %v9952_v36  ;;  %8552 = vmatprep.subr.mxu0 %v8915_v0 }
 0xe7d   : > { %8601 = vmatprep.subr.mxu1 %v8915_v0  ;;  %8553 = vmatpush3.msra.mxu0 %v10029_v5 }
 0xe7e   : > { %8602 = vmatpush3.msra.mxu1 %v9963_v24  ;;  %8554 = vmatprep.subr.mxu0 %v8915_v0 }
 0xe7f   : > { %8603 = vmatprep.subr.mxu1 %v8915_v0  ;;  %8555 = vmatpush3.msra.mxu0 %v10044_v10 }
 0xe80   : > { %8556 = vmatprep.mubr.msk.f32.mxu0 %vm8916_vm0, %v8915_v0  ;;  %8604 = vmatpush3.msra.mxu1 %v9977_v44  ;;  %v7625_v44 = vld [vmem:[%s10273_s25] ss:$0 sm:$0xff]  ;;  %s10278_s25 = smov %s10277_s27 }
 0xe81   : > { %8557 = vmatmul.mubr.f32.vlgmr.msra.gmra.mxu0 %v6976_v51  ;;  %8578 = vmatprep.subr.mxu0 %v8915_v0 }
 0xe82   : > { %8605 = vmatprep.subr.mxu1 %v8915_v0  ;;  %8579 = vmatpush3.msra.mxu0 %v7004_v38 }
 0xe83   : > { %8606 = vmatpush3.msra.mxu1 %v9992_v50  ;;  %8580 = vmatprep.subr.mxu0 %v8915_v0 }
 0xe84   : > { %8607 = vmatprep.subr.mxu1 %v8915_v0  ;;  %8581 = vmatpush3.msra.mxu0 %v7011_v30 }
 0xe85   : > { %8608 = vmatpush3.msra.mxu1 %v10002_v55  ;;  %8582 = vmatprep.subr.mxu0 %v8915_v0 }
 0xe86   : > { %8609 = vmatprep.subr.mxu1 %v8915_v0  ;;  %8583 = vmatpush3.msra.mxu0 %v7018_v48 }
 0xe87   : > { %8610 = vmatpush3.msra.mxu1 %v10018_v63  ;;  %8584 = vmatprep.subr.mxu0 %v8915_v0 }
 0xe88   : > { %8611 = vmatprep.subr.mxu1 %v8915_v0  ;;  %8585 = vmatpush3.msra.mxu0 %v7025_v54 }
 0xe89   : > { %8612 = vmatpush3.msra.mxu1 %v10031_v6  ;;  %8613 = vmatprep.mubr.msk.f32.mxu1 %vm8916_vm0, %v8915_v0 }
 0xe8a   : > { %8586 = vmatprep.subr.mxu0 %v8915_v0  ;;  %8614 = vmatmul.mubr.f32.vlgmr.msra.gmra.mxu1 %v10064_v47 }
 0xe8b   : > { %8587 = vmatpush3.msra.mxu0 %v7032_v1  ;;  %8594 = vmatprep.mubr.msk.f32.mxu0 %vm8916_vm0, %v8915_v0 }
 0xe8c   : > { %8588 = vmatprep.subr.mxu0 %v8915_v0 }
 0xe8d   : > { %8589 = vmatpush3.msra.mxu0 %v7039_v4 }
 0xe8e   : > { %8590 = vmatprep.subr.mxu0 %v8915_v0 }
 0xe8f   : > { %8591 = vmatpush3.msra.mxu0 %v7046_v9 }
 0xe90   : > { %8592 = vmatprep.subr.mxu0 %v8915_v0 }
 0xe91   : > { %8593 = vmatpush3.msra.mxu0 %v7053_v15 }
 0xe92   : > { %8595 = vmatmul.mubr.f32.vlgmr.msra.gmra.mxu0 %v10064_v47 }
 0xf28   : > { %v7092_v33 = vpop.f32.mrf.mxu1 }
 0xf2a   : > { %v8539_v35 = vpop.f32.mrf.mxu1 }
 0xf30   : > { %v6981_v36 = vpop.f32.mrf.mxu0 }
 0xf31   : > { %v6982_v48 = vadd.f32 %v7625_v44, %v6981_v36 }
 0xf32   : > { %v8520_v38 = vpop.f32.mrf.mxu0 }
 0xf33   : > { %v7093_v0 = vadd.f32 %v7092_v33, %v6982_v48 }
 0xf38   : > { %v7261_v39 = vpop.f32.mrf.mxu1 }
 0xf3a   : > { %v8577_v24 = vpop.f32.mrf.mxu1 }
 0xf41   : > { %v7180_v30 = vpop.f32.mrf.mxu0 }
 0xf42   : > { %v7181_v54 = vadd.f32 %v7180_v30, %v7093_v0 }
 0xf43   : > { %v8558_v42 = vpop.f32.mrf.mxu0 }
 0xf44   : > { %v7262_v55 = vadd.f32 %v7261_v39, %v7181_v54 }
 0xf4a   : > { %v7435_v49 = vpop.f32.mrf.mxu1 }
 0xf4c   : > { %v8615_v50 = vpop.f32.mrf.mxu1 }
 0xf52   : > { %v7356_v56 = vpop.f32.mrf.mxu0 }
 0xf53   : > { %v7357_v60 = vadd.f32 %v7356_v56, %v7262_v55 }
 0xf54   : > { %v8596_v61 = vpop.f32.mrf.mxu0 }
 0xf55   : > { %v7436_v62 = vadd.f32 %v7435_v49, %v7357_v60 }
 0xf57   : > { %v7439_v63 = vadd.f32 %v7436_v62, %v9889_v58 }
 0xf59   : > { %v7442_v1 = vsel %vm670_vm1, %v7439_v63, 0.0 }
 0xf5a   : > { %7443 = vadd.xlane.f32.xlu1 %v7442_v1 }
 0xfe3   : > { %v7444_v2 = vpop.xlane.xlu1 %7443 }
 0xfe4   : > { %v7445_v3 = vmul.f32 0.03125, %v7444_v2 }
 0xfe6   : > { %v7446_v4 = vsub.f32 %v7439_v63, %v7445_v3 }
 0xfe8   : > { %v7447_v5 = vmul.f32 %v7446_v4, %v7446_v4 }
 0xfea   : > { %v7448_v6 = vsel %vm670_vm1, %v7447_v5, 0.0 }
 0xfeb   : > { %7449 = vadd.xlane.f32.xlu1 %v7448_v6 }
0x1074   : > { %v7450_v7 = vpop.xlane.xlu1 %7449 }
0x1075   : > { %v7451_v8 = vmul.f32 0.032258064, %v7450_v7 }
0x1077   : > { %8718 = vrsqrt.f32 %v7451_v8  ;;  %vm7454_vm10 = vcmp.eq.f32.partialorder %v7451_v8, inf  ;;  %v7457_v11 = vand.u32 2147483648, %v7451_v8  ;;  %vm7456_vm11 = vcmp.eq.f32.partialorder %v7451_v8, 0.0 }
0x1084   : > { %v8719_v9 = vpop.eup %8718 }
0x1085   : > { %v7453_v10 = vmul.f32 %v8719_v9, %v7451_v8 }
0x1087   : > { %v7455_v58 = vsel %vm7454_vm10, %v7451_v8, %v7453_v10 }
0x1088   : > { %v7458_v13 = vsel %vm7456_vm11, %v7457_v11, %v7455_v58 }
0x1089   : > { %v7459_v14 = vadd.f32 1e-09, %v7458_v13 }
0x108b   : > { %8720 = vrcp.f32 %v7459_v14 }
0x1098   : > { %v8721_v15 = vpop.eup %8720 }
0x1099   : > { %v7461_v18 = vmul.f32 %v8721_v15, %v7446_v4 }
0x109b   : > { %v7468_v19 = vmul.f32 %v7626_v16, %v7461_v18 }
0x109d   : > { %v7475_v43 = vadd.f32 %v7627_v17, %v7468_v19 }
0x109f   : > { %7476 = vst.msk [vmem:[%s656_s24] sm:$0xff] %vm670_vm1, %v7475_v43 }
0x10a0   : > { %8844 = shalt.err (!%p8841_p4)
}
0x10a1   : > { %s8845_s13 = scalar_lea.hbm %s7489_s3, 128  ;;  %s8849_s1 = scalar_lea.hbm %s10278_s25, 256 }
0x10a2   : > { %p8846_p10 = scmp.ne.s32.totalorder %s7489_s3, %s8845_s13  ;;  %p8850_p11 = scmp.lt.s32.totalorder %s7489_s3, %s10278_s25 }
0x10a3   : > { %p8851_p2 = scmp.lt.s32.totalorder %s8849_s1, %s8845_s13 }
0x10a4   : > { %p8847_p0 = pnand %p8846_p10, %p10279_p7 }
0x10a5   : > { %p8852_p6 = por %p8851_p2, %p8850_p11 }
0x10a6   : > { %p8848_p8 = pneg %p8847_p0 }
0x10a8   : > { %p8853_p12 = pnand %p8852_p6, %p8848_p8 }
0x10aa   : > { %8856 = shalt.err (!%p8853_p12)
}
0x10ab   : > { %8628 = dma.vmem_to_hbm [thread:$0]  (%p10279_p7), %s7492_s20, 128, %s7489_s3, %s7478_s4  }
0x10ac PF: > { %s10280_s24 = sld [smem:[#allocation17_spill]]  ;;  %p10283_p13 = scmp.ge.s32.totalorder %s8907_s30, 2 }
0x10ad   : > { %s10281_s19 = sld [smem:[#allocation19_spill]] }
0x10b2   : > { %s7503_s12 = sand.u32 1, %s10280_s24  }
0x10b3   : > { %p10282_p9 = scmp.ne.s32.totalorder %s10281_s19, 0  ;;  %s7504_s27 = scalar_lea.sflag [#allocation5], %s7503_s12 }
0x10b5   : > { %p8645_p5 = pnand %p10283_p13, %p10282_p9 }
0x10b7   : > { %p8646_p1 = pneg %p8645_p5 }
0x10b9   : > { %8890 = dma.done.wait (%p8646_p1), %s7504_s27, 128  }
0x10ba   : > { %8892 = vsyncadd (%p8646_p1), %s7504_s27, 4294967168  ;;  %s10284_s30 = sld [smem:[#allocation20_spill]]  ;;  %s10287_s27 = smov %s8899_s28 }
0x10bb   : > { %s10285_s2 = sld [smem:[#allocation18_spill]] }
0x10bc   : > { %s10286_s29 = sld [smem:[#allocation22_spill]] }
0x10c0   : > { %p35_p3 = scmp.ge.s32.totalorder %s10284_s30, 4  }
0x10c1   : > { %s10288_s28 = smov %s10285_s2 }
0x10c2   :  { %37 = sbr.rel (!%p35_p3) target bundleno = 22 (0x16), region = 158 }
0x10c7   :  { %7509 = vsyncpa [#allocation4], 1 }
0x10c8   :  { %7511 = vsyncpa [#allocation4 + $0x1], 1 }
0x10c9   :  { %7512 = vsyncpa [#allocation7], 1 }
0x10ca   :  { %7514 = vsyncpa [#allocation7 + $0x1], 1 }
0x10cb   :  { %7515 = vsyncpa [#allocation10], 1 }
0x10cc   :  { %7516 = vsyncpa [#allocation5], 1 }
0x10cd   :  { %7518 = vsyncpa [#allocation5 + $0x1], 1 }

</bundles_post_ra>
